<compile_context>
chip_gen: v7x
topology: tpu7x:2x2x1
jax: 0.10.0
libtpu: 0.0.40
codegen_flags: <defaults>
</compile_context>

<pallas_src>
import functools

import jax
import jax.numpy as jnp
import numpy as np
from jax.experimental import pallas as pl
from jax.experimental.pallas import tpu as pltpu

EPS = 1e-5  # nn.BatchNorm2d default


def _round_up(x, m):
    return (x + m - 1) // m * m


def _conv_relu_stats_kernel(x_ref, w_ref, b_ref, mask_ref,
                            y_ref, sum_ref, sumsq_ref, xf32_ref,
                            *, img_w, kh, kw):
    """Per-image: conv(3x3, VALID) + bias + ReLU, plus per-channel sum/sumsq.

    x_ref:    (HWpad, Cin_p)   bf16 flattened NHWC rows (zero padded)
    w_ref:    (kh*kw, Cin_p, Cout_p) bf16 per-tap weight matrices
    b_ref:    (1, Cout_p)      f32 conv bias
    mask_ref: (Lrows, 1)       f32 validity mask (wrap-around columns -> 0)
    y_ref:    (Lrows, Cout_p)  f32 activations (full-width rows per image)
    sum_ref, sumsq_ref: (1, Cout_p) f32 accumulators resident across the grid
    xf32_ref: (HWpad, Cin_p)   f32 VMEM scratch staging copy
    """
    lrows, _ = y_ref.shape

    # Stage the bf16 tile as f32 once; per-tap row-shifted slices then come
    # from a 32-bit ref (robust unaligned sublane slicing) and are cast back
    # to bf16 (exact) right before the MXU.
    xf32_ref[...] = x_ref[...].astype(jnp.float32)

    # Conv as kh*kw accumulated MXU matmuls over shifted flat-row windows.
    acc = None
    for i in range(kh):
        for j in range(kw):
            off = i * img_w + j
            xs = xf32_ref[pl.ds(off, lrows), :].astype(jnp.bfloat16)
            part = jnp.dot(xs, w_ref[i * kw + j],
                           preferred_element_type=jnp.float32)
            acc = part if acc is None else acc + part

    y = jnp.maximum(acc + b_ref[...], 0.0)   # bias + ReLU (f32)
    y = y * mask_ref[...]                    # zero wrap-around garbage rows
    y_ref[...] = y

    # Two-phase BN, phase 1: one-pass per-channel sum / sum-of-squares,
    # accumulated across the "arbitrary" batch grid axis.
    @pl.when(pl.program_id(0) == 0)
    def _init():
        sum_ref[...] = jnp.zeros_like(sum_ref)
        sumsq_ref[...] = jnp.zeros_like(sumsq_ref)

    sum_ref[...] += jnp.sum(y, axis=0, keepdims=True)
    sumsq_ref[...] += jnp.sum(y * y, axis=0, keepdims=True)


def _bn_apply_kernel(y_ref, scale_ref, shift_ref, o_ref):
    """Two-phase BN, phase 2: o = y * scale + shift (per channel)."""
    o_ref[...] = y_ref[...] * scale_ref[...] + shift_ref[...]


def conv_block_forward(x_nchw, conv_w, conv_b, bn_gamma, bn_beta):
    """x_nchw: (N, Cin, H, W); conv_w: (Cout, Cin, 3, 3); conv_b/bn_*: (Cout,)."""
    n, cin, h, w = x_nchw.shape
    cout, _, kh, kw = conv_w.shape
    ho, wo = h - kh + 1, w - kw + 1

    cin_p = _round_up(cin, 128)
    cout_p = _round_up(cout, 128)
    lrows = ho * w                         # "full-width" output rows per image
    max_off = (kh - 1) * w + (kw - 1)      # largest tap shift in flat rows
    hw_pad = _round_up(max(h * w, lrows + max_off), 16)

    # ---- JAX glue: layout only (no im2col). NCHW -> flat NHWC rows, padded.
    x_flat = jnp.transpose(x_nchw, (0, 2, 3, 1)).reshape(n, h * w, cin)
    x_flat = jnp.pad(x_flat, ((0, 0), (0, hw_pad - h * w), (0, cin_p - cin)))
    x_flat = x_flat.astype(jnp.bfloat16)   # bf16 operands, f32 accumulation

    # (Cout, Cin, kh, kw) -> (kh*kw, Cin_p, Cout_p), tap order matching kernel.
    w_taps = jnp.transpose(conv_w, (2, 3, 1, 0)).reshape(kh * kw, cin, cout)
    w_taps = jnp.pad(w_taps, ((0, 0), (0, cin_p - cin), (0, cout_p - cout)))
    w_taps = w_taps.astype(jnp.bfloat16)

    b_p = jnp.pad(conv_b.astype(jnp.float32), (0, cout_p - cout)).reshape(1, cout_p)
    g_p = jnp.pad(bn_gamma.astype(jnp.float32), (0, cout_p - cout)).reshape(1, cout_p)
    bt_p = jnp.pad(bn_beta.astype(jnp.float32), (0, cout_p - cout)).reshape(1, cout_p)

    # Rows whose within-image column >= Wo wrap to the next image row -> mask.
    col = jnp.arange(lrows, dtype=jnp.int32) % w
    row_mask = (col < wo).astype(jnp.float32).reshape(lrows, 1)

    kernel1 = functools.partial(_conv_relu_stats_kernel, img_w=w, kh=kh, kw=kw)
    y_full, ch_sum, ch_sumsq = pl.pallas_call(
        kernel1,
        out_shape=(
            jax.ShapeDtypeStruct((n, lrows, cout_p), jnp.float32),
            jax.ShapeDtypeStruct((1, cout_p), jnp.float32),
            jax.ShapeDtypeStruct((1, cout_p), jnp.float32),
        ),
        grid=(n,),
        in_specs=[
            pl.BlockSpec((None, hw_pad, cin_p), lambda b: (b, 0, 0)),
            pl.BlockSpec((kh * kw, cin_p, cout_p), lambda b: (0, 0, 0)),
            pl.BlockSpec((1, cout_p), lambda b: (0, 0)),
            pl.BlockSpec((lrows, 1), lambda b: (0, 0)),
        ],
        out_specs=(
            pl.BlockSpec((None, lrows, cout_p), lambda b: (b, 0, 0)),
            pl.BlockSpec((1, cout_p), lambda b: (0, 0)),
            pl.BlockSpec((1, cout_p), lambda b: (0, 0)),
        ),
        scratch_shapes=[pltpu.VMEM((hw_pad, cin_p), jnp.float32)],
        compiler_params=pltpu.CompilerParams(
            dimension_semantics=("arbitrary",)),  # stats accumulate across grid
        cost_estimate=pl.CostEstimate(
            flops=2 * n * kh * kw * lrows * cin_p * cout_p,
            transcendentals=0,
            bytes_accessed=(n * hw_pad * cin_p * 2
                            + kh * kw * cin_p * cout_p * 2
                            + n * lrows * cout_p * 4
                            + 3 * cout_p * 4)),
    )(x_flat, w_taps, b_p, row_mask)

    # ---- Tiny per-channel stats combine (training-mode BN, biased variance).
    count = float(n * ho * wo)
    mean = ch_sum / count
    var = jnp.maximum(ch_sumsq / count - mean * mean, 0.0)
    inv_std = jax.lax.rsqrt(var + EPS)
    scale = g_p * inv_std                  # (1, Cout_p)
    shift = bt_p - mean * scale

    out_full = pl.pallas_call(
        _bn_apply_kernel,
        out_shape=jax.ShapeDtypeStruct((n, lrows, cout_p), jnp.float32),
        grid=(n,),
        in_specs=[
            pl.BlockSpec((None, lrows, cout_p), lambda b: (b, 0, 0)),
            pl.BlockSpec((1, cout_p), lambda b: (0, 0)),
            pl.BlockSpec((1, cout_p), lambda b: (0, 0)),
        ],
        out_specs=pl.BlockSpec((None, lrows, cout_p), lambda b: (b, 0, 0)),
        compiler_params=pltpu.CompilerParams(
            dimension_semantics=("parallel",)),
        cost_estimate=pl.CostEstimate(
            flops=2 * n * lrows * cout_p,
            transcendentals=0,
            bytes_accessed=2 * n * lrows * cout_p * 4 + 2 * cout_p * 4),
    )(y_full, scale, shift)

    # ---- JAX glue: drop wrap/pad columns and padded channels, back to NCHW.
    out_nhwc = out_full.reshape(n, ho, w, cout_p)[:, :, :wo, :cout]
    return jnp.transpose(out_nhwc, (0, 3, 1, 2))


def _reference_forward(x_nchw, conv_w, conv_b, bn_gamma, bn_beta,
                       *, bf16_matmul=False):
    """Pure-JAX reference (PyTorch semantics, training-mode BN)."""
    if bf16_matmul:  # mimic the kernel's bf16 operands / f32 accumulation
        x_nchw = x_nchw.astype(jnp.bfloat16).astype(jnp.float32)
        conv_w = conv_w.astype(jnp.bfloat16).astype(jnp.float32)
    y = jax.lax.conv_general_dilated(
        x_nchw, conv_w, window_strides=(1, 1), padding="VALID",
        dimension_numbers=("NCHW", "OIHW", "NCHW"),
        precision=jax.lax.Precision.HIGHEST)
    y = y + conv_b.reshape(1, -1, 1, 1)
    y = jnp.maximum(y, 0.0)
    mean = jnp.mean(y, axis=(0, 2, 3), keepdims=True)
    var = jnp.mean((y - mean) ** 2, axis=(0, 2, 3), keepdims=True)
    y = (y - mean) * jax.lax.rsqrt(var + EPS)
    return y * bn_gamma.reshape(1, -1, 1, 1) + bn_beta.reshape(1, -1, 1, 1)


if __name__ == "__main__":
    key = jax.random.PRNGKey(0)
    k_x, k_w, k_b = jax.random.split(key, 3)

    N, CIN, COUT, H, W = 2, 4, 8, 16, 16

    x = jax.random.normal(k_x, (N, CIN, H, W), dtype=jnp.float32)
    conv_w = jax.random.normal(k_w, (COUT, CIN, 3, 3), dtype=jnp.float32) * 0.1
    conv_b = jax.random.normal(k_b, (COUT,), dtype=jnp.float32) * 0.1
    bn_gamma = jnp.ones((COUT,), dtype=jnp.float32)   # BatchNorm2d weight default
    bn_beta = jnp.zeros((COUT,), dtype=jnp.float32)   # BatchNorm2d bias default

    fwd = jax.jit(conv_block_forward)
    out = jax.block_until_ready(fwd(x, conv_w, conv_b, bn_gamma, bn_beta))
    assert out.shape == (N, COUT, H - 2, W - 2)

    # Tight check: same bf16-rounded conv operands, f32 accumulation everywhere.
    ref_bf16 = jax.block_until_ready(_reference_forward(
        x, conv_w, conv_b, bn_gamma, bn_beta, bf16_matmul=True))
    np.testing.assert_allclose(np.asarray(out), np.asarray(ref_bf16),
                               atol=1e-3, rtol=1e-3)

    # Sanity check vs full-f32 PyTorch-style reference (bf16 matmul tolerance).
    ref_f32 = jax.block_until_ready(_reference_forward(
        x, conv_w, conv_b, bn_gamma, bn_beta, bf16_matmul=False))
    np.testing.assert_allclose(np.asarray(out), np.asarray(ref_f32),
                               atol=5e-2, rtol=5e-2)

    print("KERNEL_OK")
</pallas_src>

<mosaic_0001>
module attributes {stable_mosaic.version = 11 : i64} {
  func.func @_conv_relu_stats_kernel(%arg0: i32, %arg1: memref<1x272x128xbf16, #tpu.memory_space<vmem>>, %arg2: memref<9x128x128xbf16, #tpu.memory_space<vmem>>, %arg3: memref<1x128xf32, #tpu.memory_space<vmem>>, %arg4: memref<224x1xf32, #tpu.memory_space<vmem>>, %arg5: memref<1x224x128xf32, #tpu.memory_space<vmem>>, %arg6: memref<1x128xf32, #tpu.memory_space<vmem>>, %arg7: memref<1x128xf32, #tpu.memory_space<vmem>>, %arg8: memref<272x128xf32, #tpu.memory_space<vmem>>) attributes {dimension_semantics = [#tpu.dimension_semantics<arbitrary>], iteration_bounds = array<i64: 2>, scalar_prefetch = 0 : i64, scratch_operands = 1 : i64, tpu.core_type = #tpu.core_type<tc>, window_params = [{transform_indices = @transform_0, window_bounds = array<i64: 1, 272, 128>}, {pipeline_mode = #tpu.pipeline_mode<synchronous>, transform_indices = @transform_1, window_bounds = array<i64: 9, 128, 128>}, {pipeline_mode = #tpu.pipeline_mode<synchronous>, transform_indices = @transform_2, window_bounds = array<i64: 1, 128>}, {pipeline_mode = #tpu.pipeline_mode<synchronous>, transform_indices = @transform_3, window_bounds = array<i64: 224, 1>}, {transform_indices = @transform_4, window_bounds = array<i64: 1, 224, 128>}, {pipeline_mode = #tpu.pipeline_mode<synchronous>, transform_indices = @transform_5, window_bounds = array<i64: 1, 128>}, {pipeline_mode = #tpu.pipeline_mode<synchronous>, transform_indices = @transform_6, window_bounds = array<i64: 1, 128>}]} {
    %c0 = arith.constant 0 : index
    %c0_0 = arith.constant 0 : index
    %c0_1 = arith.constant 0 : index
    %0 = vector.load %arg1[%c0, %c0_0, %c0_1] : memref<1x272x128xbf16, #tpu.memory_space<vmem>>, vector<1x272x128xbf16>
    %1 = vector.shape_cast %0 : vector<1x272x128xbf16> to vector<272x128xbf16>
    %2 = arith.extf %1 : vector<272x128xbf16> to vector<272x128xf32>
    %c0_2 = arith.constant 0 : index
    %c0_3 = arith.constant 0 : index
    %3 = vector.load %arg8[%c0_2, %c0_3] : memref<272x128xf32, #tpu.memory_space<vmem>>, vector<272x128xf32>
    tpu.vector_store %arg8[%c0_2, %c0_3], %2 {strides = array<i32>} : memref<272x128xf32, #tpu.memory_space<vmem>>, vector<272x128xf32>,
    %c0_4 = arith.constant 0 : index
    %c0_5 = arith.constant 0 : index
    %4 = vector.load %arg8[%c0_4, %c0_5] : memref<272x128xf32, #tpu.memory_space<vmem>>, vector<224x128xf32>
    %5 = arith.truncf %4 : vector<224x128xf32> to vector<224x128xbf16>
    %c0_6 = arith.constant 0 : index
    %c0_7 = arith.constant 0 : index
    %c0_8 = arith.constant 0 : index
    %6 = vector.load %arg2[%c0_6, %c0_7, %c0_8] : memref<9x128x128xbf16, #tpu.memory_space<vmem>>, vector<1x128x128xbf16>
    %7 = vector.shape_cast %6 : vector<1x128x128xbf16> to vector<128x128xbf16>
    %cst = arith.constant dense<0.000000e+00> : vector<224x128xf32>
    %8 = tpu.matmul %5, %7, %cst {dimension_numbers = #tpu.dot_dimension_numbers<[1], [0], [0], [1], [0, 0, 1, 1], [], []>} : vector<224x128xbf16>, vector<128x128xbf16>, vector<224x128xf32> -> vector<224x128xf32>
    %c1 = arith.constant 1 : index
    %c0_9 = arith.constant 0 : index
    %9 = vector.load %arg8[%c1, %c0_9] : memref<272x128xf32, #tpu.memory_space<vmem>>, vector<224x128xf32>
    %10 = arith.truncf %9 : vector<224x128xf32> to vector<224x128xbf16>
    %c1_10 = arith.constant 1 : index
    %c0_11 = arith.constant 0 : index
    %c0_12 = arith.constant 0 : index
    %11 = vector.load %arg2[%c1_10, %c0_11, %c0_12] : memref<9x128x128xbf16, #tpu.memory_space<vmem>>, vector<1x128x128xbf16>
    %12 = vector.shape_cast %11 : vector<1x128x128xbf16> to vector<128x128xbf16>
    %cst_13 = arith.constant dense<0.000000e+00> : vector<224x128xf32>
    %13 = tpu.matmul %10, %12, %cst_13 {dimension_numbers = #tpu.dot_dimension_numbers<[1], [0], [0], [1], [0, 0, 1, 1], [], []>} : vector<224x128xbf16>, vector<128x128xbf16>, vector<224x128xf32> -> vector<224x128xf32>
    %14 = arith.addf %8, %13 : vector<224x128xf32>
    %c2 = arith.constant 2 : index
    %c0_14 = arith.constant 0 : index
    %15 = vector.load %arg8[%c2, %c0_14] : memref<272x128xf32, #tpu.memory_space<vmem>>, vector<224x128xf32>
    %16 = arith.truncf %15 : vector<224x128xf32> to vector<224x128xbf16>
    %c2_15 = arith.constant 2 : index
    %c0_16 = arith.constant 0 : index
    %c0_17 = arith.constant 0 : index
    %17 = vector.load %arg2[%c2_15, %c0_16, %c0_17] : memref<9x128x128xbf16, #tpu.memory_space<vmem>>, vector<1x128x128xbf16>
    %18 = vector.shape_cast %17 : vector<1x128x128xbf16> to vector<128x128xbf16>
    %cst_18 = arith.constant dense<0.000000e+00> : vector<224x128xf32>
    %19 = tpu.matmul %16, %18, %cst_18 {dimension_numbers = #tpu.dot_dimension_numbers<[1], [0], [0], [1], [0, 0, 1, 1], [], []>} : vector<224x128xbf16>, vector<128x128xbf16>, vector<224x128xf32> -> vector<224x128xf32>
    %20 = arith.addf %14, %19 : vector<224x128xf32>
    %c16 = arith.constant 16 : index
    %c0_19 = arith.constant 0 : index
    %21 = vector.load %arg8[%c16, %c0_19] : memref<272x128xf32, #tpu.memory_space<vmem>>, vector<224x128xf32>
    %22 = arith.truncf %21 : vector<224x128xf32> to vector<224x128xbf16>
    %c3 = arith.constant 3 : index
    %c0_20 = arith.constant 0 : index
    %c0_21 = arith.constant 0 : index
    %23 = vector.load %arg2[%c3, %c0_20, %c0_21] : memref<9x128x128xbf16, #tpu.memory_space<vmem>>, vector<1x128x128xbf16>
    %24 = vector.shape_cast %23 : vector<1x128x128xbf16> to vector<128x128xbf16>
    %cst_22 = arith.constant dense<0.000000e+00> : vector<224x128xf32>
    %25 = tpu.matmul %22, %24, %cst_22 {dimension_numbers = #tpu.dot_dimension_numbers<[1], [0], [0], [1], [0, 0, 1, 1], [], []>} : vector<224x128xbf16>, vector<128x128xbf16>, vector<224x128xf32> -> vector<224x128xf32>
    %26 = arith.addf %20, %25 : vector<224x128xf32>
    %c17 = arith.constant 17 : index
    %c0_23 = arith.constant 0 : index
    %27 = vector.load %arg8[%c17, %c0_23] : memref<272x128xf32, #tpu.memory_space<vmem>>, vector<224x128xf32>
    %28 = arith.truncf %27 : vector<224x128xf32> to vector<224x128xbf16>
    %c4 = arith.constant 4 : index
    %c0_24 = arith.constant 0 : index
    %c0_25 = arith.constant 0 : index
    %29 = vector.load %arg2[%c4, %c0_24, %c0_25] : memref<9x128x128xbf16, #tpu.memory_space<vmem>>, vector<1x128x128xbf16>
    %30 = vector.shape_cast %29 : vector<1x128x128xbf16> to vector<128x128xbf16>
    %cst_26 = arith.constant dense<0.000000e+00> : vector<224x128xf32>
    %31 = tpu.matmul %28, %30, %cst_26 {dimension_numbers = #tpu.dot_dimension_numbers<[1], [0], [0], [1], [0, 0, 1, 1], [], []>} : vector<224x128xbf16>, vector<128x128xbf16>, vector<224x128xf32> -> vector<224x128xf32>
    %32 = arith.addf %26, %31 : vector<224x128xf32>
    %c18 = arith.constant 18 : index
    %c0_27 = arith.constant 0 : index
    %33 = vector.load %arg8[%c18, %c0_27] : memref<272x128xf32, #tpu.memory_space<vmem>>, vector<224x128xf32>
    %34 = arith.truncf %33 : vector<224x128xf32> to vector<224x128xbf16>
    %c5 = arith.constant 5 : index
    %c0_28 = arith.constant 0 : index
    %c0_29 = arith.constant 0 : index
    %35 = vector.load %arg2[%c5, %c0_28, %c0_29] : memref<9x128x128xbf16, #tpu.memory_space<vmem>>, vector<1x128x128xbf16>
    %36 = vector.shape_cast %35 : vector<1x128x128xbf16> to vector<128x128xbf16>
    %cst_30 = arith.constant dense<0.000000e+00> : vector<224x128xf32>
    %37 = tpu.matmul %34, %36, %cst_30 {dimension_numbers = #tpu.dot_dimension_numbers<[1], [0], [0], [1], [0, 0, 1, 1], [], []>} : vector<224x128xbf16>, vector<128x128xbf16>, vector<224x128xf32> -> vector<224x128xf32>
    %38 = arith.addf %32, %37 : vector<224x128xf32>
    %c32 = arith.constant 32 : index
    %c0_31 = arith.constant 0 : index
    %39 = vector.load %arg8[%c32, %c0_31] : memref<272x128xf32, #tpu.memory_space<vmem>>, vector<224x128xf32>
    %40 = arith.truncf %39 : vector<224x128xf32> to vector<224x128xbf16>
    %c6 = arith.constant 6 : index
    %c0_32 = arith.constant 0 : index
    %c0_33 = arith.constant 0 : index
    %41 = vector.load %arg2[%c6, %c0_32, %c0_33] : memref<9x128x128xbf16, #tpu.memory_space<vmem>>, vector<1x128x128xbf16>
    %42 = vector.shape_cast %41 : vector<1x128x128xbf16> to vector<128x128xbf16>
    %cst_34 = arith.constant dense<0.000000e+00> : vector<224x128xf32>
    %43 = tpu.matmul %40, %42, %cst_34 {dimension_numbers = #tpu.dot_dimension_numbers<[1], [0], [0], [1], [0, 0, 1, 1], [], []>} : vector<224x128xbf16>, vector<128x128xbf16>, vector<224x128xf32> -> vector<224x128xf32>
    %44 = arith.addf %38, %43 : vector<224x128xf32>
    %c33 = arith.constant 33 : index
    %c0_35 = arith.constant 0 : index
    %45 = vector.load %arg8[%c33, %c0_35] : memref<272x128xf32, #tpu.memory_space<vmem>>, vector<224x128xf32>
    %46 = arith.truncf %45 : vector<224x128xf32> to vector<224x128xbf16>
    %c7 = arith.constant 7 : index
    %c0_36 = arith.constant 0 : index
    %c0_37 = arith.constant 0 : index
    %47 = vector.load %arg2[%c7, %c0_36, %c0_37] : memref<9x128x128xbf16, #tpu.memory_space<vmem>>, vector<1x128x128xbf16>
    %48 = vector.shape_cast %47 : vector<1x128x128xbf16> to vector<128x128xbf16>
    %cst_38 = arith.constant dense<0.000000e+00> : vector<224x128xf32>
    %49 = tpu.matmul %46, %48, %cst_38 {dimension_numbers = #tpu.dot_dimension_numbers<[1], [0], [0], [1], [0, 0, 1, 1], [], []>} : vector<224x128xbf16>, vector<128x128xbf16>, vector<224x128xf32> -> vector<224x128xf32>
    %50 = arith.addf %44, %49 : vector<224x128xf32>
    %c34 = arith.constant 34 : index
    %c0_39 = arith.constant 0 : index
    %51 = vector.load %arg8[%c34, %c0_39] : memref<272x128xf32, #tpu.memory_space<vmem>>, vector<224x128xf32>
    %52 = arith.truncf %51 : vector<224x128xf32> to vector<224x128xbf16>
    %c8 = arith.constant 8 : index
    %c0_40 = arith.constant 0 : index
    %c0_41 = arith.constant 0 : index
    %53 = vector.load %arg2[%c8, %c0_40, %c0_41] : memref<9x128x128xbf16, #tpu.memory_space<vmem>>, vector<1x128x128xbf16>
    %54 = vector.shape_cast %53 : vector<1x128x128xbf16> to vector<128x128xbf16>
    %cst_42 = arith.constant dense<0.000000e+00> : vector<224x128xf32>
    %55 = tpu.matmul %52, %54, %cst_42 {dimension_numbers = #tpu.dot_dimension_numbers<[1], [0], [0], [1], [0, 0, 1, 1], [], []>} : vector<224x128xbf16>, vector<128x128xbf16>, vector<224x128xf32> -> vector<224x128xf32>
    %56 = arith.addf %50, %55 : vector<224x128xf32>
    %c0_43 = arith.constant 0 : index
    %c0_44 = arith.constant 0 : index
    %57 = vector.load %arg3[%c0_43, %c0_44] : memref<1x128xf32, #tpu.memory_space<vmem>>, vector<1x128xf32>
    %58 = vector.broadcast %57 : vector<1x128xf32> to vector<224x128xf32>
    %59 = arith.addf %56, %58 : vector<224x128xf32>
    %cst_45 = arith.constant 0.000000e+00 : f32
    %60 = vector.broadcast %cst_45 : f32 to vector<224x128xf32>
    %61 = arith.maximumf %59, %60 : vector<224x128xf32>
    %c0_46 = arith.constant 0 : index
    %c0_47 = arith.constant 0 : index
    %62 = vector.load %arg4[%c0_46, %c0_47] : memref<224x1xf32, #tpu.memory_space<vmem>>, vector<224x1xf32>
    %63 = vector.broadcast %62 : vector<224x1xf32> to vector<224x128xf32>
    %64 = arith.mulf %61, %63 : vector<224x128xf32>
    %c0_48 = arith.constant 0 : index
    %c0_49 = arith.constant 0 : index
    %c0_50 = arith.constant 0 : index
    %65 = vector.load %arg5[%c0_48, %c0_49, %c0_50] : memref<1x224x128xf32, #tpu.memory_space<vmem>>, vector<1x224x128xf32>
    %66 = vector.shape_cast %65 : vector<1x224x128xf32> to vector<224x128xf32>
    %67 = vector.shape_cast %64 : vector<224x128xf32> to vector<1x224x128xf32>
    tpu.vector_store %arg5[%c0_48, %c0_49, %c0_50], %67 {strides = array<i32>} : memref<1x224x128xf32, #tpu.memory_space<vmem>>, vector<1x224x128xf32>,
    %c0_i32 = arith.constant 0 : i32
    %68 = arith.cmpi eq, %arg0, %c0_i32 : i32
    %69 = arith.extui %68 : i1 to i32
    %c0_i32_51 = arith.constant 0 : i32
    %70 = arith.cmpi ne, %69, %c0_i32_51 : i32
    scf.if %70 {
      %cst_62 = arith.constant 0.000000e+00 : f32
      %82 = vector.broadcast %cst_62 : f32 to vector<1x128xf32>
      %c0_63 = arith.constant 0 : index
      %c0_64 = arith.constant 0 : index
      %83 = vector.load %arg6[%c0_63, %c0_64] : memref<1x128xf32, #tpu.memory_space<vmem>>, vector<1x128xf32>
      tpu.vector_store %arg6[%c0_63, %c0_64], %82 {strides = array<i32>} : memref<1x128xf32, #tpu.memory_space<vmem>>, vector<1x128xf32>,
      %cst_65 = arith.constant 0.000000e+00 : f32
      %84 = vector.broadcast %cst_65 : f32 to vector<1x128xf32>
      %c0_66 = arith.constant 0 : index
      %c0_67 = arith.constant 0 : index
      %85 = vector.load %arg7[%c0_66, %c0_67] : memref<1x128xf32, #tpu.memory_space<vmem>>, vector<1x128xf32>
      tpu.vector_store %arg7[%c0_66, %c0_67], %84 {strides = array<i32>} : memref<1x128xf32, #tpu.memory_space<vmem>>, vector<1x128xf32>,
    } else {
    }
    %c0_52 = arith.constant 0 : index
    %c0_53 = arith.constant 0 : index
    %71 = vector.load %arg6[%c0_52, %c0_53] : memref<1x128xf32, #tpu.memory_space<vmem>>, vector<1x128xf32>
    %cst_54 = arith.constant dense<0.000000e+00> : vector<128xf32>
    %72 = vector.multi_reduction <add>, %64, %cst_54 [0] : vector<224x128xf32> to vector<128xf32>
    %73 = vector.shape_cast %72 : vector<128xf32> to vector<1x128xf32>
    %74 = arith.addf %71, %73 : vector<1x128xf32>
    %c0_55 = arith.constant 0 : index
    %c0_56 = arith.constant 0 : index
    %75 = vector.load %arg6[%c0_55, %c0_56] : memref<1x128xf32, #tpu.memory_space<vmem>>, vector<1x128xf32>
    tpu.vector_store %arg6[%c0_55, %c0_56], %74 {strides = array<i32>} : memref<1x128xf32, #tpu.memory_space<vmem>>, vector<1x128xf32>,
    %c0_57 = arith.constant 0 : index
    %c0_58 = arith.constant 0 : index
    %76 = vector.load %arg7[%c0_57, %c0_58] : memref<1x128xf32, #tpu.memory_space<vmem>>, vector<1x128xf32>
    %77 = arith.mulf %64, %64 : vector<224x128xf32>
    %cst_59 = arith.constant dense<0.000000e+00> : vector<128xf32>
    %78 = vector.multi_reduction <add>, %77, %cst_59 [0] : vector<224x128xf32> to vector<128xf32>
    %79 = vector.shape_cast %78 : vector<128xf32> to vector<1x128xf32>
    %80 = arith.addf %76, %79 : vector<1x128xf32>
    %c0_60 = arith.constant 0 : index
    %c0_61 = arith.constant 0 : index
    %81 = vector.load %arg7[%c0_60, %c0_61] : memref<1x128xf32, #tpu.memory_space<vmem>>, vector<1x128xf32>
    tpu.vector_store %arg7[%c0_60, %c0_61], %80 {strides = array<i32>} : memref<1x128xf32, #tpu.memory_space<vmem>>, vector<1x128xf32>,
    return
  }
  func.func @transform_0(%arg0: i32) -> (i32, i32, i32) {
    %c0_i32 = arith.constant 0 : i32
    %c0_i32_0 = arith.constant 0 : i32
    %c0_i32_1 = arith.constant 0 : i32
    return %arg0, %c0_i32, %c0_i32_0 : i32, i32, i32
  }
  func.func @transform_1(%arg0: i32) -> (i32, i32, i32) {
    %c0_i32 = arith.constant 0 : i32
    %c0_i32_0 = arith.constant 0 : i32
    %c0_i32_1 = arith.constant 0 : i32
    %c0_i32_2 = arith.constant 0 : i32
    return %c0_i32, %c0_i32_0, %c0_i32_1 : i32, i32, i32
  }
  func.func @transform_2(%arg0: i32) -> (i32, i32) {
    %c0_i32 = arith.constant 0 : i32
    %c0_i32_0 = arith.constant 0 : i32
    %c0_i32_1 = arith.constant 0 : i32
    return %c0_i32, %c0_i32_0 : i32, i32
  }
  func.func @transform_3(%arg0: i32) -> (i32, i32) {
    %c0_i32 = arith.constant 0 : i32
    %c0_i32_0 = arith.constant 0 : i32
    %c0_i32_1 = arith.constant 0 : i32
    return %c0_i32, %c0_i32_0 : i32, i32
  }
  func.func @transform_4(%arg0: i32) -> (i32, i32, i32) {
    %c0_i32 = arith.constant 0 : i32
    %c0_i32_0 = arith.constant 0 : i32
    %c0_i32_1 = arith.constant 0 : i32
    return %arg0, %c0_i32, %c0_i32_0 : i32, i32, i32
  }
  func.func @transform_5(%arg0: i32) -> (i32, i32) {
    %c0_i32 = arith.constant 0 : i32
    %c0_i32_0 = arith.constant 0 : i32
    %c0_i32_1 = arith.constant 0 : i32
    return %c0_i32, %c0_i32_0 : i32, i32
  }
  func.func @transform_6(%arg0: i32) -> (i32, i32) {
    %c0_i32 = arith.constant 0 : i32
    %c0_i32_0 = arith.constant 0 : i32
    %c0_i32_1 = arith.constant 0 : i32
    return %c0_i32, %c0_i32_0 : i32, i32
  }
}

module attributes {stable_mosaic.version = 11 : i64} {
  func.func @_bn_apply_kernel(%arg0: i32, %arg1: memref<1x224x128xf32, #tpu.memory_space<vmem>>, %arg2: memref<1x128xf32, #tpu.memory_space<vmem>>, %arg3: memref<1x128xf32, #tpu.memory_space<vmem>>, %arg4: memref<1x224x128xf32, #tpu.memory_space<vmem>>) attributes {dimension_semantics = [#tpu.dimension_semantics<parallel>], iteration_bounds = array<i64: 2>, scalar_prefetch = 0 : i64, scratch_operands = 0 : i64, tpu.core_type = #tpu.core_type<tc>, window_params = [{transform_indices = @transform_0, window_bounds = array<i64: 1, 224, 128>}, {pipeline_mode = #tpu.pipeline_mode<synchronous>, transform_indices = @transform_1, window_bounds = array<i64: 1, 128>}, {pipeline_mode = #tpu.pipeline_mode<synchronous>, transform_indices = @transform_2, window_bounds = array<i64: 1, 128>}, {transform_indices = @transform_3, window_bounds = array<i64: 1, 224, 128>}]} {
    %c0 = arith.constant 0 : index
    %c0_0 = arith.constant 0 : index
    %c0_1 = arith.constant 0 : index
    %0 = vector.load %arg1[%c0, %c0_0, %c0_1] : memref<1x224x128xf32, #tpu.memory_space<vmem>>, vector<1x224x128xf32>
    %1 = vector.shape_cast %0 : vector<1x224x128xf32> to vector<224x128xf32>
    %c0_2 = arith.constant 0 : index
    %c0_3 = arith.constant 0 : index
    %2 = vector.load %arg2[%c0_2, %c0_3] : memref<1x128xf32, #tpu.memory_space<vmem>>, vector<1x128xf32>
    %3 = vector.broadcast %2 : vector<1x128xf32> to vector<224x128xf32>
    %4 = arith.mulf %1, %3 : vector<224x128xf32>
    %c0_4 = arith.constant 0 : index
    %c0_5 = arith.constant 0 : index
    %5 = vector.load %arg3[%c0_4, %c0_5] : memref<1x128xf32, #tpu.memory_space<vmem>>, vector<1x128xf32>
    %6 = vector.broadcast %5 : vector<1x128xf32> to vector<224x128xf32>
    %7 = arith.addf %4, %6 : vector<224x128xf32>
    %c0_6 = arith.constant 0 : index
    %c0_7 = arith.constant 0 : index
    %c0_8 = arith.constant 0 : index
    %8 = vector.load %arg4[%c0_6, %c0_7, %c0_8] : memref<1x224x128xf32, #tpu.memory_space<vmem>>, vector<1x224x128xf32>
    %9 = vector.shape_cast %8 : vector<1x224x128xf32> to vector<224x128xf32>
    %10 = vector.shape_cast %7 : vector<224x128xf32> to vector<1x224x128xf32>
    tpu.vector_store %arg4[%c0_6, %c0_7, %c0_8], %10 {strides = array<i32>} : memref<1x224x128xf32, #tpu.memory_space<vmem>>, vector<1x224x128xf32>,
    return
  }
  func.func @transform_0(%arg0: i32) -> (i32, i32, i32) {
    %c0_i32 = arith.constant 0 : i32
    %c0_i32_0 = arith.constant 0 : i32
    %c0_i32_1 = arith.constant 0 : i32
    return %arg0, %c0_i32, %c0_i32_0 : i32, i32, i32
  }
  func.func @transform_1(%arg0: i32) -> (i32, i32) {
    %c0_i32 = arith.constant 0 : i32
    %c0_i32_0 = arith.constant 0 : i32
    %c0_i32_1 = arith.constant 0 : i32
    return %c0_i32, %c0_i32_0 : i32, i32
  }
  func.func @transform_2(%arg0: i32) -> (i32, i32) {
    %c0_i32 = arith.constant 0 : i32
    %c0_i32_0 = arith.constant 0 : i32
    %c0_i32_1 = arith.constant 0 : i32
    return %c0_i32, %c0_i32_0 : i32, i32
  }
  func.func @transform_3(%arg0: i32) -> (i32, i32, i32) {
    %c0_i32 = arith.constant 0 : i32
    %c0_i32_0 = arith.constant 0 : i32
    %c0_i32_1 = arith.constant 0 : i32
    return %arg0, %c0_i32, %c0_i32_0 : i32, i32, i32
  }
}

</mosaic_0001>

<bundles_post_ra>
// kernel: conv_block_forward.3
= control target key start
LH: loop header
LB: loop body
LE: loop exit
PB: predicated region body
PF: predicated region fallthrough
CT: control target
= control target key end

     0   :  { %s400_s12 = smov 0   ;;  %s543_s0 = inlined_call_operand.vmem [shape: f32[2,224,128], index: 0, kind: input, shape index: {}]   ;;  %s544_s1 = inlined_call_operand.vmem [shape: f32[1,128], index: 1, kind: input, shape index: {}]   ;;  %s545_s2 = inlined_call_operand.vmem [shape: f32[1,128], index: 2, kind: input, shape index: {}]   ;;  %s546_s3 = inlined_call_operand.vmem [shape: f32[2,224,128], index: 3, kind: output, shape index: {}]  }
   0x1 LB: > { %s352_s13 = sadd.s32 4294967295, %s378_s12   ;;  %p356_p0 = scmp.ge.s32.totalorder %s378_s12, 1  ;;  %s378_s12 = sphi %s400_s12, %s13_s12  }
   0x2   : > { %p137_p1 = scmp.lt.s32.totalorder %s378_s12, 3 }
   0x4   : > { %p138_p2 = pnand %p356_p0, %p137_p1 }
   0x5   : > { %p161_p3 = scmp.lt.s32.totalorder (!%p138_p2), %s352_s13, 1  ;;  %v411_v0 = vld [vmem:[%s544_s1] ss:$0 sm:$0xff] (!%p138_p2) }
   0x6   : > { %141 = sbr.rel (%p138_p2) target bundleno = 38 (0x26), region = 32  ;;  %v421_v1 = vld [vmem:[%s545_s2] ss:$0 sm:$0xff] (!%p138_p2) }
   0xd   : > { %s548_s13 = smov (!%p161_p3, %s352_s13), 1 }
   0xe   : > { %s363_s14 = smul.u32 224, %s548_s13 }
  0x10   : > { %s416_s19 = scalar_lea.vmem %s543_s0, %s363_s14  ;;  %s435_s24 = scalar_lea.vmem %s546_s3, %s363_s14 }
  0x11   : > { %v171_v2 = vld [vmem:[%s416_s19] sm:$0xff]  ;;  %v172_v3 = vld [vmem:[%s416_s19 + $0x8] sm:$0xff]  ;;  %v173_v4 = vld [vmem:[%s416_s19 + $0x10] sm:$0xff] }
  0x12   : > { %v206_v5 = vmul.f32 %v411_v0, %v171_v2  ;;  %v207_v6 = vmul.f32 %v411_v0, %v172_v3  ;;  %v208_v7 = vmul.f32 %v411_v0, %v173_v4  ;;  %v174_v8 = vld [vmem:[%s416_s19 + $0x18] sm:$0xff]  ;;  %v175_v9 = vld [vmem:[%s416_s19 + $0x20] sm:$0xff]  ;;  %v176_v10 = vld [vmem:[%s416_s19 + $0x28] sm:$0xff] }
  0x13   : > { %v209_v11 = vmul.f32 %v411_v0, %v174_v8  ;;  %v210_v12 = vmul.f32 %v411_v0, %v175_v9  ;;  %v211_v13 = vmul.f32 %v411_v0, %v176_v10  ;;  %v177_v14 = vld [vmem:[%s416_s19 + $0x30] sm:$0xff]  ;;  %v178_v15 = vld [vmem:[%s416_s19 + $0x38] sm:$0xff]  ;;  %v179_v16 = vld [vmem:[%s416_s19 + $0x40] sm:$0xff] }
  0x14   : > { %v241_v17 = vadd.f32 %v421_v1, %v206_v5  ;;  %v242_v18 = vadd.f32 %v421_v1, %v207_v6  ;;  %v243_v19 = vadd.f32 %v421_v1, %v208_v7  ;;  %v212_v20 = vmul.f32 %v411_v0, %v177_v14  ;;  %v180_v21 = vld [vmem:[%s416_s19 + $0x48] sm:$0xff]  ;;  %v181_v22 = vld [vmem:[%s416_s19 + $0x50] sm:$0xff]  ;;  %v182_v23 = vld [vmem:[%s416_s19 + $0x58] sm:$0xff] }
  0x15   : > { %v244_v24 = vadd.f32 %v421_v1, %v209_v11  ;;  %v245_v25 = vadd.f32 %v421_v1, %v210_v12  ;;  %v246_v26 = vadd.f32 %v421_v1, %v211_v13  ;;  %v213_v27 = vmul.f32 %v411_v0, %v178_v15  ;;  %v183_v28 = vld [vmem:[%s416_s19 + $0x60] sm:$0xff]  ;;  %v184_v29 = vld [vmem:[%s416_s19 + $0x68] sm:$0xff]  ;;  %v185_v30 = vld [vmem:[%s416_s19 + $0x70] sm:$0xff] }
  0x16   : > { %269 = vst [vmem:[%s435_s24] sm:$0xff] %v241_v17  ;;  %270 = vst [vmem:[%s435_s24 + $0x8] sm:$0xff] %v242_v18  ;;  %v247_v31 = vadd.f32 %v421_v1, %v212_v20  ;;  %v214_v32 = vmul.f32 %v411_v0, %v179_v16  ;;  %v215_v33 = vmul.f32 %v411_v0, %v180_v21  ;;  %v186_v35 = vld [vmem:[%s416_s19 + $0x78] sm:$0xff]  ;;  %v187_v40 = vld [vmem:[%s416_s19 + $0x80] sm:$0xff] }
  0x17   : > { %271 = vst [vmem:[%s435_s24 + $0x10] sm:$0xff] %v243_v19  ;;  %v216_v34 = vmul.f32 %v411_v0, %v181_v22  ;;  %272 = vst [vmem:[%s435_s24 + $0x18] sm:$0xff] %v244_v24  ;;  %v248_v36 = vadd.f32 %v421_v1, %v213_v27  ;;  %v217_v37 = vmul.f32 %v411_v0, %v182_v23  ;;  %v188_v41 = vld [vmem:[%s416_s19 + $0x88] sm:$0xff]  ;;  %v189_v42 = vld [vmem:[%s416_s19 + $0x90] sm:$0xff] }
  0x18   : > { %273 = vst [vmem:[%s435_s24 + $0x20] sm:$0xff] %v245_v25  ;;  %274 = vst [vmem:[%s435_s24 + $0x28] sm:$0xff] %v246_v26  ;;  %v218_v38 = vmul.f32 %v411_v0, %v183_v28  ;;  %v219_v39 = vmul.f32 %v411_v0, %v184_v29  ;;  %v249_v43 = vadd.f32 %v421_v1, %v214_v32  ;;  %v190_v47 = vld [vmem:[%s416_s19 + $0x98] sm:$0xff]  ;;  %v191_v48 = vld [vmem:[%s416_s19 + $0xa0] sm:$0xff] }
  0x19   : > { %275 = vst [vmem:[%s435_s24 + $0x30] sm:$0xff] %v247_v31  ;;  %v250_v44 = vadd.f32 %v421_v1, %v215_v33  ;;  %v251_v45 = vadd.f32 %v421_v1, %v216_v34  ;;  %v220_v46 = vmul.f32 %v411_v0, %v185_v30  ;;  %v192_v49 = vld [vmem:[%s416_s19 + $0xa8] sm:$0xff]  ;;  %276 = vst [vmem:[%s435_s24 + $0x38] sm:$0xff] %v248_v36  ;;  %v193_v54 = vld [vmem:[%s416_s19 + $0xb0] sm:$0xff] }
  0x1a   : > { %v252_v50 = vadd.f32 %v421_v1, %v217_v37  ;;  %v253_v51 = vadd.f32 %v421_v1, %v218_v38  ;;  %v254_v52 = vadd.f32 %v421_v1, %v219_v39  ;;  %v221_v53 = vmul.f32 %v411_v0, %v186_v35  ;;  %277 = vst [vmem:[%s435_s24 + $0x40] sm:$0xff] %v249_v43  ;;  %v194_v59 = vld [vmem:[%s416_s19 + $0xb8] sm:$0xff]  ;;  %v195_v2 = vld [vmem:[%s416_s19 + $0xc0] sm:$0xff]  ;;  %v196_v3 = vld [vmem:[%s416_s19 + $0xc8] sm:$0xff] }
  0x1b   : > { %278 = vst [vmem:[%s435_s24 + $0x48] sm:$0xff] %v250_v44  ;;  %279 = vst [vmem:[%s435_s24 + $0x50] sm:$0xff] %v251_v45  ;;  %v255_v55 = vadd.f32 %v421_v1, %v220_v46  ;;  %v222_v56 = vmul.f32 %v411_v0, %v187_v40  ;;  %v223_v57 = vmul.f32 %v411_v0, %v188_v41  ;;  %v197_v4 = vld [vmem:[%s416_s19 + $0xd0] sm:$0xff]  ;;  %v198_v9 = vld [vmem:[%s416_s19 + $0xd8] sm:$0xff] }
  0x1c   : > { %v224_v58 = vmul.f32 %v411_v0, %v189_v42  ;;  %280 = vst [vmem:[%s435_s24 + $0x58] sm:$0xff] %v252_v50  ;;  %281 = vst [vmem:[%s435_s24 + $0x60] sm:$0xff] %v253_v51  ;;  %v256_v60 = vadd.f32 %v421_v1, %v221_v53  ;;  %v225_v61 = vmul.f32 %v411_v0, %v190_v47 }
  0x1d   : > { %282 = vst [vmem:[%s435_s24 + $0x68] sm:$0xff] %v254_v52  ;;  %v226_v62 = vmul.f32 %v411_v0, %v191_v48  ;;  %v227_v63 = vmul.f32 %v411_v0, %v192_v49  ;;  %283 = vst [vmem:[%s435_s24 + $0x70] sm:$0xff] %v255_v55  ;;  %v257_v5 = vadd.f32 %v421_v1, %v222_v56 }
  0x1e   : > { %v258_v6 = vadd.f32 %v421_v1, %v223_v57  ;;  %v259_v7 = vadd.f32 %v421_v1, %v224_v58  ;;  %v228_v8 = vmul.f32 %v411_v0, %v193_v54  ;;  %284 = vst [vmem:[%s435_s24 + $0x78] sm:$0xff] %v256_v60  ;;  %v260_v10 = vadd.f32 %v421_v1, %v225_v61 }
  0x1f   : > { %v261_v11 = vadd.f32 %v421_v1, %v226_v62  ;;  %v262_v12 = vadd.f32 %v421_v1, %v227_v63  ;;  %v229_v13 = vmul.f32 %v411_v0, %v194_v59  ;;  %285 = vst [vmem:[%s435_s24 + $0x80] sm:$0xff] %v257_v5  ;;  %v230_v15 = vmul.f32 %v411_v0, %v195_v2 }
  0x20   : > { %286 = vst [vmem:[%s435_s24 + $0x88] sm:$0xff] %v258_v6  ;;  %287 = vst [vmem:[%s435_s24 + $0x90] sm:$0xff] %v259_v7  ;;  %v263_v14 = vadd.f32 %v421_v1, %v228_v8  ;;  %v231_v16 = vmul.f32 %v411_v0, %v196_v3  ;;  %v232_v17 = vmul.f32 %v411_v0, %v197_v4 }
  0x21   : > { %288 = vst [vmem:[%s435_s24 + $0x98] sm:$0xff] %v260_v10  ;;  %289 = vst [vmem:[%s435_s24 + $0xa0] sm:$0xff] %v261_v11  ;;  %v264_v18 = vadd.f32 %v421_v1, %v229_v13  ;;  %v233_v19 = vmul.f32 %v411_v0, %v198_v9  ;;  %v265_v20 = vadd.f32 %v421_v1, %v230_v15 }
  0x22   : > { %290 = vst [vmem:[%s435_s24 + $0xa8] sm:$0xff] %v262_v12  ;;  %291 = vst [vmem:[%s435_s24 + $0xb0] sm:$0xff] %v263_v14  ;;  %v266_v21 = vadd.f32 %v421_v1, %v231_v16  ;;  %v267_v22 = vadd.f32 %v421_v1, %v232_v17 }
  0x23   : > { %292 = vst [vmem:[%s435_s24 + $0xb8] sm:$0xff] %v264_v18  ;;  %v268_v23 = vadd.f32 %v421_v1, %v233_v19  ;;  %293 = vst [vmem:[%s435_s24 + $0xc0] sm:$0xff] %v265_v20 }
  0x24   : > { %294 = vst [vmem:[%s435_s24 + $0xc8] sm:$0xff] %v266_v21  ;;  %295 = vst [vmem:[%s435_s24 + $0xd0] sm:$0xff] %v267_v22 }
  0x25   : > { %296 = vst [vmem:[%s435_s24 + $0xd8] sm:$0xff] %v268_v23 }
  0x26 PF: > { %s13_s12 = sadd.s32 1, %s378_s12  }
  0x27   : > { %p10_p4 = scmp.ge.s32.totalorder %s13_s12, 4  }
  0x29   :  { %12 = sbr.rel (!%p10_p4) target bundleno = 1 (0x1), region = 62 }

// kernel: conv_block_forward.2
= control target key start
LH: loop header
LB: loop body
LE: loop exit
PB: predicated region body
PF: predicated region fallthrough
CT: control target
= control target key end

     0   :  { %s4558_s21 = smov 0   ;;  %s5355_s0 = inlined_call_operand.vmem [shape: bf16[2,272,128], index: 0, kind: input, shape index: {}]   ;;  %s5356_s1 = inlined_call_operand.vmem [shape: bf16[9,128,128], index: 1, kind: input, shape index: {}]   ;;  %s5357_s2 = inlined_call_operand.vmem [shape: f32[1,128], index: 2, kind: input, shape index: {}]   ;;  %s5358_s3 = inlined_call_operand.vmem [shape: f32[224,1], index: 3, kind: input, shape index: {}]   ;;  %s5359_s4 = inlined_call_operand.vmem [shape: f32[2,224,128], index: 4, kind: output, shape index: {0}]   ;;  %s5360_s5 = inlined_call_operand.vmem [shape: f32[1,128], index: 5, kind: output, shape index: {1}]   ;;  %s5361_s6 = inlined_call_operand.vmem [shape: f32[1,128], index: 6, kind: output, shape index: {2}]  }
   0x1 LB: > { %s4564_s22 = sadd.s32 4294967295, %s4519_s21   ;;  %p3277_p0 = scmp.ge.s32.totalorder %s4519_s21, 1  ;;  %s4519_s21 = sphi %s4558_s21, %s17_s21  }
   0x2   : > { %p207_p1 = scmp.lt.s32.totalorder %s4519_s21, 3 }
   0x4   : > { %p208_p2 = pnand %p3277_p0, %p207_p1 }
   0x5   : > { %v4416_v0 = vld [vmem:[%s5356_s1 + $0x40] sm:$0xff] (!%p208_p2)   ;;  %p237_p3 = scmp.lt.s32.totalorder (!%p208_p2), %s4564_s22, 1  ;;  %v4418_v2 = vld [vmem:[%s5356_s1 + $0x48] sm:$0xff] (!%p208_p2)   ;;  %v4420_v4 = vld [vmem:[%s5356_s1 + $0x50] sm:$0xff] (!%p208_p2)   ;;  %p3481_p4 = scmp.ne.s32.totalorder (!%p208_p2), %s4564_s22, 0 }
   0x6   : > { %211 = sbr.rel (%p208_p2) target bundleno = 582 (0x246), region = 36  ;;  %v4417_v1 = vld [vmem:[%s5356_s1 + $0x100] sm:$0xff] (!%p208_p2)   ;;  %3766 = vmatprep.subr.bf16.mxu1 (!%p208_p2), %v4416_v0  ;;  %v4419_v3 = vld [vmem:[%s5356_s1 + $0x108] sm:$0xff] (!%p208_p2)   ;;  %v4421_v5 = vld [vmem:[%s5356_s1 + $0x110] sm:$0xff] (!%p208_p2)  }
   0x7   : > { %3942 = vmatprep.subr.bf16.mxu0 (!%p208_p2), %v4417_v1  ;;  %3767 = vmatpush3.bf16.msra.mxu1 (!%p208_p2), %v4416_v0  ;;  %v4422_v6 = vld [vmem:[%s5356_s1 + $0x58] sm:$0xff] (!%p208_p2)   ;;  %v4424_v8 = vld [vmem:[%s5356_s1 + $0x60] sm:$0xff] (!%p208_p2)   ;;  %v4426_v10 = vld [vmem:[%s5356_s1 + $0x68] sm:$0xff] (!%p208_p2)  }
   0x8   : > { %3943 = vmatpush3.bf16.msra.mxu0 (!%p208_p2), %v4417_v1  ;;  %3768 = vmatprep.subr.bf16.mxu1 (!%p208_p2), %v4418_v2  ;;  %v4423_v7 = vld [vmem:[%s5356_s1 + $0x118] sm:$0xff] (!%p208_p2)   ;;  %v4425_v9 = vld [vmem:[%s5356_s1 + $0x120] sm:$0xff] (!%p208_p2)   ;;  %v4427_v11 = vld [vmem:[%s5356_s1 + $0x128] sm:$0xff] (!%p208_p2)  }
   0x9   : > { %3944 = vmatprep.subr.bf16.mxu0 (!%p208_p2), %v4419_v3  ;;  %v4428_v25 = vld [vmem:[%s5356_s1 + $0x70] sm:$0xff] (!%p208_p2)   ;;  %v4430_v32 = vld [vmem:[%s5356_s1 + $0x78] sm:$0xff] (!%p208_p2)   ;;  %v4434_v46 = vld [vmem:[%s5356_s1] sm:$0xff] (!%p208_p2)  }
   0xa   : > { %v4429_v29 = vld [vmem:[%s5356_s1 + $0x130] sm:$0xff] (!%p208_p2)   ;;  %v4431_v35 = vld [vmem:[%s5356_s1 + $0x138] sm:$0xff] (!%p208_p2)   ;;  %v4432_v50 = vld [vmem:[%s5356_s1 + $0x140] sm:$0xff] (!%p208_p2)  }
   0xb   : > { %3769 = vmatpush3.bf16.msra.mxu1 (!%p208_p2), %v4418_v2  ;;  %v4433_v60 = vld [vmem:[%s5356_s1 + $0x148] sm:$0xff] (!%p208_p2)   ;;  %v4435_v0 = vld [vmem:[%s5356_s1 + $0x150] sm:$0xff] (!%p208_p2)  }
   0xc   : > { %3945 = vmatpush3.bf16.msra.mxu0 (!%p208_p2), %v4419_v3  ;;  %3770 = vmatprep.subr.bf16.mxu1 (!%p208_p2), %v4420_v4  ;;  %v4437_v61 = vld [vmem:[%s5356_s1 + $0x8] sm:$0xff] (!%p208_p2)  }
   0xd   : > { %s4588_s11 = scalar_select %p237_p3, %s4564_s22, 1  ;;  %3946 = vmatprep.subr.bf16.mxu0 %v4421_v5 }
   0xf   : > { %s4402_s16 = smul.u32 136, %s4588_s11  ;;  %3771 = vmatpush3.bf16.msra.mxu1 %v4420_v4  ;;  %v4440_v4 = vld [vmem:[%s5356_s1 + $0x10] sm:$0xff]  }
  0x10   : > { %3947 = vmatpush3.bf16.msra.mxu0 %v4421_v5  ;;  %3772 = vmatprep.subr.bf16.mxu1 %v4422_v6  ;;  %s4403_s18 = smul.u32 224, %s4588_s11 }
  0x11   : > { %3948 = vmatprep.subr.bf16.mxu0 %v4423_v7  ;;  %s4606_s25 = scalar_lea.vmem %s5355_s0, %s4402_s16 }
  0x12   : > { %v3485_v12 = vld [vmem:[%s4606_s25] sm:$0xff]   ;;  %v3552_v13 = vld [vmem:[%s4606_s25 + $0x8] sm:$0xff]   ;;  %v3553_v14 = vld [vmem:[%s4606_s25 + $0x10] sm:$0xff]   ;;  %s5077_s11 = scalar_lea.vmem %s5359_s4, %s4403_s18 }
  0x13   : > { %3773 = vmatpush3.bf16.msra.mxu1 %v4422_v6  ;;  %v3486_v15 = vunpack.c.l.bf16 %v3485_v12  ;;  %v3487_v16 = vunpack.c.h.bf16 %v3485_v12  ;;  %v3490_v17 = vunpack.c.l.bf16 %v3552_v13  ;;  %v3491_v18 = vunpack.c.h.bf16 %v3552_v13  ;;  %v3554_v19 = vld [vmem:[%s4606_s25 + $0x18] sm:$0xff]   ;;  %v3555_v24 = vld [vmem:[%s4606_s25 + $0x20] sm:$0xff]   ;;  %v3556_v28 = vld [vmem:[%s4606_s25 + $0x28] sm:$0xff]  }
  0x14   : > { %3949 = vmatpush3.bf16.msra.mxu0 %v4423_v7  ;;  %3774 = vmatprep.subr.bf16.mxu1 %v4424_v8  ;;  %v3494_v20 = vunpack.c.l.bf16 %v3553_v14  ;;  %v3495_v21 = vunpack.c.h.bf16 %v3553_v14  ;;  %v3498_v22 = vunpack.c.l.bf16 %v3554_v19  ;;  %v3499_v23 = vunpack.c.h.bf16 %v3554_v19  ;;  %v3557_v33 = vld [vmem:[%s4606_s25 + $0x30] sm:$0xff]   ;;  %v3558_v34 = vld [vmem:[%s4606_s25 + $0x38] sm:$0xff]   ;;  %v3559_v54 = vld [vmem:[%s4606_s25 + $0x40] sm:$0xff]  }
  0x15   : > { %3950 = vmatprep.subr.bf16.mxu0 %v4425_v9  ;;  %316 = vst [vmem:[#allocation2] sm:$0xff] %v3486_v15  ;;  %317 = vst [vmem:[#allocation2 + $0x8] sm:$0xff] %v3487_v16  ;;  %v3502_v26 = vunpack.c.l.bf16 %v3555_v24  ;;  %v3503_v27 = vunpack.c.h.bf16 %v3555_v24  ;;  %v3506_v30 = vunpack.c.l.bf16 %v3556_v28  ;;  %v3507_v31 = vunpack.c.h.bf16 %v3556_v28  ;;  %v3560_v55 = vld [vmem:[%s4606_s25 + $0x48] sm:$0xff]   ;;  %v3561_v3 = vld [vmem:[%s4606_s25 + $0x50] sm:$0xff]  }
  0x16   : > { %318 = vst [vmem:[#allocation2 + $0x10] sm:$0xff] %v3490_v17  ;;  %319 = vst [vmem:[#allocation2 + $0x18] sm:$0xff] %v3491_v18  ;;  %v3510_v36 = vunpack.c.l.bf16 %v3557_v33  ;;  %v3511_v37 = vunpack.c.h.bf16 %v3557_v33  ;;  %v3514_v38 = vunpack.c.l.bf16 %v3558_v34  ;;  %v3515_v39 = vunpack.c.h.bf16 %v3558_v34  ;;  %v4443_v13 = vld [vmem:[%s5356_s1 + $0x18] sm:$0xff]   ;;  %v4438_v16 = vld [vmem:[%s5356_s1 + $0x160] sm:$0xff]  }
  0x17   : > { %3775 = vmatpush3.bf16.msra.mxu1 %v4424_v8  ;;  %320 = vst [vmem:[#allocation2 + $0x20] sm:$0xff] %v3494_v20  ;;  %321 = vst [vmem:[#allocation2 + $0x28] sm:$0xff] %v3495_v21  ;;  %v3518_v56 = vunpack.c.l.bf16 %v3559_v54  ;;  %v3519_v57 = vunpack.c.h.bf16 %v3559_v54  ;;  %v3522_v58 = vunpack.c.l.bf16 %v3560_v55  ;;  %v3523_v59 = vunpack.c.h.bf16 %v3560_v55  ;;  %v3563_v17 = vld [vmem:[%s4606_s25 + $0x60] sm:$0xff]   ;;  %v3565_v28 = vld [vmem:[%s4606_s25 + $0x70] sm:$0xff]  }
  0x18   : > { %3951 = vmatpush3.bf16.msra.mxu0 %v4425_v9  ;;  %3776 = vmatprep.subr.bf16.mxu1 %v4426_v10  ;;  %322 = vst [vmem:[#allocation2 + $0x30] sm:$0xff] %v3498_v22  ;;  %323 = vst [vmem:[#allocation2 + $0x38] sm:$0xff] %v3499_v23  ;;  %v3526_v5 = vunpack.c.l.bf16 %v3561_v3  ;;  %v3527_v6 = vunpack.c.h.bf16 %v3561_v3  ;;  %v3562_v9 = vld [vmem:[%s4606_s25 + $0x58] sm:$0xff]   ;;  %v3534_v19 = vunpack.c.l.bf16 %v3563_v17  ;;  %v3535_v20 = vunpack.c.h.bf16 %v3563_v17  ;;  %v4445_v22 = vld [vmem:[%s5356_s1 + $0x20] sm:$0xff]  }
  0x19   : > { %3952 = vmatprep.subr.bf16.mxu0 %v4427_v11  ;;  %324 = vst [vmem:[#allocation2 + $0x40] sm:$0xff] %v3502_v26  ;;  %325 = vst [vmem:[#allocation2 + $0x48] sm:$0xff] %v3503_v27  ;;  %v3531_v12 = vunpack.c.h.bf16 %v3562_v9  ;;  %v3564_v23 = vld [vmem:[%s4606_s25 + $0x68] sm:$0xff]   ;;  %v4454_v17 = vld [vmem:[%s5356_s1 + $0x1a0] sm:$0xff]  }
  0x1a   : > { %326 = vst [vmem:[#allocation2 + $0x50] sm:$0xff] %v3506_v30  ;;  %327 = vst [vmem:[#allocation2 + $0x58] sm:$0xff] %v3507_v31  ;;  %v3539_v26 = vunpack.c.h.bf16 %v3564_v23  ;;  %v3542_v30 = vunpack.c.l.bf16 %v3565_v28  ;;  %v3543_v31 = vunpack.c.h.bf16 %v3565_v28  ;;  %v4453_v28 = vld [vmem:[%s4606_s25 + $0x8] sm:$0xff] }
  0x1b   : > { %3777 = vmatpush3.bf16.msra.mxu1 %v4426_v10  ;;  %328 = vst [vmem:[#allocation2 + $0x60] sm:$0xff] %v3510_v36  ;;  %329 = vst [vmem:[#allocation2 + $0x68] sm:$0xff] %v3511_v37  ;;  %v4436_v10 = vld [vmem:[%s5356_s1 + $0x158] sm:$0xff]  }
  0x1c   : > { %3953 = vmatpush3.bf16.msra.mxu0 %v4427_v11  ;;  %3778 = vmatprep.subr.bf16.mxu1 %v4428_v25  ;;  %v408_v40 = vld [vmem:[#allocation2 + $0x1] sm:$0xff]  ;;  %330 = vst [vmem:[#allocation2 + $0x70] sm:$0xff] %v3514_v38  ;;  %331 = vst [vmem:[#allocation2 + $0x78] sm:$0xff] %v3515_v39  ;;  %v3530_v11 = vunpack.c.l.bf16 %v3562_v9  ;;  %v4449_v38 = vld [vmem:[%s5356_s1 + $0x30] sm:$0xff]  }
  0x1d   : > { %3954 = vmatprep.subr.bf16.mxu0 %v4429_v29  ;;  %v409_v41 = vld [vmem:[#allocation2 + $0x9] sm:$0xff]  ;;  %v1413_v42 = vld [vmem:[#allocation2 + $0x11] sm:$0xff]  ;;  %332 = vst [vmem:[#allocation2 + $0x80] sm:$0xff] %v3518_v56  ;;  %333 = vst [vmem:[#allocation2 + $0x88] sm:$0xff] %v3519_v57 }
  0x1e   : > { %v436_v43 = vpack.c.bf16 %v409_v41, %v408_v40  ;;  %v1414_v44 = vld [vmem:[#allocation2 + $0x19] sm:$0xff]  ;;  %v1415_v45 = vld [vmem:[#allocation2 + $0x21] sm:$0xff]  ;;  %334 = vst [vmem:[#allocation2 + $0x90] sm:$0xff] %v3522_v58  ;;  %335 = vst [vmem:[#allocation2 + $0x98] sm:$0xff] %v3523_v59 }
  0x1f   : > { %3779 = vmatpush3.bf16.msra.mxu1 %v4428_v25  ;;  %v1441_v47 = vpack.c.bf16 %v1414_v44, %v1413_v42  ;;  %v1416_v48 = vld [vmem:[#allocation2 + $0x29] sm:$0xff]  ;;  %v1417_v49 = vld [vmem:[#allocation2 + $0x31] sm:$0xff]  ;;  %336 = vst [vmem:[#allocation2 + $0xa0] sm:$0xff] %v3526_v5  ;;  %337 = vst [vmem:[#allocation2 + $0xa8] sm:$0xff] %v3527_v6  ;;  %v3538_v25 = vunpack.c.l.bf16 %v3564_v23 }
  0x20   : > { %3955 = vmatpush3.bf16.msra.mxu0 %v4429_v29  ;;  %3780 = vmatprep.subr.bf16.mxu1 %v4430_v32  ;;  %v1418_v51 = vld [vmem:[#allocation2 + $0x39] sm:$0xff]  ;;  %v1442_v52 = vpack.c.bf16 %v1416_v48, %v1415_v45  ;;  %v1419_v62 = vld [vmem:[#allocation2 + $0x41] sm:$0xff]  ;;  %338 = vst [vmem:[#allocation2 + $0xb0] sm:$0xff] %v3530_v11  ;;  %339 = vst [vmem:[#allocation2 + $0xb8] sm:$0xff] %v3531_v12 }
  0x21   : > { %3956 = vmatprep.subr.bf16.mxu0 %v4431_v35  ;;  %3782 = vmatprep.mubr.bf16.mxu1 %v436_v43  ;;  %v1443_v53 = vpack.c.bf16 %v1418_v51, %v1417_v49  ;;  %v1420_v63 = vld [vmem:[#allocation2 + $0x49] sm:$0xff]  ;;  %v1421_v1 = vld [vmem:[#allocation2 + $0x51] sm:$0xff]  ;;  %340 = vst [vmem:[#allocation2 + $0xc0] sm:$0xff] %v3534_v19  ;;  %341 = vst [vmem:[#allocation2 + $0xc8] sm:$0xff] %v3535_v20 }
  0x22   : > { %3958 = vmatprep.mubr.bf16.mxu0 %v1441_v47  ;;  %v1422_v2 = vld [vmem:[#allocation2 + $0x59] sm:$0xff]  ;;  %v1444_v7 = vpack.c.bf16 %v1420_v63, %v1419_v62  ;;  %v1423_v14 = vld [vmem:[#allocation2 + $0x61] sm:$0xff]  ;;  %342 = vst [vmem:[#allocation2 + $0xd0] sm:$0xff] %v3538_v25  ;;  %343 = vst [vmem:[#allocation2 + $0xd8] sm:$0xff] %v3539_v26 }
  0x23   : > { %3781 = vmatpush3.bf16.msra.mxu1 %v4430_v32  ;;  %v1445_v8 = vpack.c.bf16 %v1422_v2, %v1421_v1  ;;  %v1424_v15 = vld [vmem:[#allocation2 + $0x69] sm:$0xff]  ;;  %v1425_v18 = vld [vmem:[#allocation2 + $0x71] sm:$0xff]  ;;  %344 = vst [vmem:[#allocation2 + $0xe0] sm:$0xff] %v3542_v30  ;;  %345 = vst [vmem:[#allocation2 + $0xe8] sm:$0xff] %v3543_v31 }
  0x24   : > { %3957 = vmatpush3.bf16.msra.mxu0 %v4431_v35  ;;  %3810 = vmatprep.subr.bf16.mxu1 %v4434_v46  ;;  %v1426_v21 = vld [vmem:[#allocation2 + $0x79] sm:$0xff]  ;;  %v1446_v24 = vpack.c.bf16 %v1424_v15, %v1423_v14  ;;  %v4439_v29 = vld [vmem:[%s5356_s1 + $0x168] sm:$0xff]   ;;  %v4441_v35 = vld [vmem:[%s5356_s1 + $0x170] sm:$0xff]  }
  0x25   : > { %3986 = vmatprep.subr.bf16.mxu0 %v4432_v50  ;;  %v1447_v27 = vpack.c.bf16 %v1426_v21, %v1425_v18  ;;  %v4447_v32 = vld [vmem:[%s5356_s1 + $0x28] sm:$0xff]   ;;  %v1693_v36 = vld [vmem:[#allocation2 + $0x12] sm:$0xff]  ;;  %v1694_v37 = vld [vmem:[#allocation2 + $0x1a] sm:$0xff] }
  0x26   : > { %3783 = vmatmul.mubr.bf16.vlgmr.msra.gmra.mrb[0].mxu1 %v1441_v47  ;;  %v1427_v33 = vld [vmem:[#allocation2 + $0x81] sm:$0xff]  ;;  %v1428_v34 = vld [vmem:[#allocation2 + $0x89] sm:$0xff]  ;;  %v4683_v40 = vpack.c.bf16 %v1694_v37, %v1693_v36  ;;  %v4442_v41 = vld [vmem:[%s5356_s1 + $0x178] sm:$0xff]  }
  0x27   : > { %3959 = vmatmul.mubr.bf16.vlgmr.msra.gmra.mrb[0].mxu0 %v1442_v52  ;;  %3786 = vmatprep.mubr.bf16.mxu1 %v1442_v52  ;;  %v1448_v39 = vpack.c.bf16 %v1428_v34, %v1427_v33  ;;  %v426_v42 = vld [vmem:[#allocation2 + $0x91] sm:$0xff]  ;;  %v1695_v43 = vld [vmem:[#allocation2 + $0x22] sm:$0xff]  ;;  %v1698_v51 = vld [vmem:[#allocation2 + $0x3a] sm:$0xff] }
  0x28   : > { %3987 = vmatpush3.bf16.msra.mxu0 %v4432_v50  ;;  %3962 = vmatprep.mubr.bf16.mxu0 %v1443_v53  ;;  %v1696_v44 = vld [vmem:[#allocation2 + $0x2a] sm:$0xff]  ;;  %v4450_v45 = vld [vmem:[%s5356_s1 + $0x38] sm:$0xff]   ;;  %v4444_v47 = vld [vmem:[%s5356_s1 + $0x180] sm:$0xff]  }
  0x29   : > { %3988 = vmatprep.subr.bf16.mxu0 %v4433_v60  ;;  %3811 = vmatpush3.bf16.msra.mxu1 %v4434_v46  ;;  %v427_v46 = vld [vmem:[#allocation2 + $0x99] sm:$0xff]  ;;  %v428_v48 = vld [vmem:[#allocation2 + $0xa1] sm:$0xff]  ;;  %v429_v49 = vld [vmem:[#allocation2 + $0xa9] sm:$0xff]  ;;  %v4702_v54 = vpack.c.bf16 %v1696_v44, %v1695_v43 }
  0x2a   : > { %3812 = vmatprep.subr.bf16.mxu1 %v4437_v61  ;;  %v1697_v50 = vld [vmem:[#allocation2 + $0x32] sm:$0xff]  ;;  %v4695_v52 = vpack.c.bf16 %v427_v46, %v426_v42  ;;  %v4704_v55 = vpack.c.bf16 %v429_v49, %v428_v48  ;;  %v4446_v57 = vld [vmem:[%s5356_s1 + $0x188] sm:$0xff]   ;;  %v1702_v5 = vld [vmem:[#allocation2 + $0x5a] sm:$0xff] }
  0x2b   : > { %v4706_v56 = vpack.c.bf16 %v1698_v51, %v1697_v50  ;;  %v430_v58 = vld [vmem:[#allocation2 + $0xb1] sm:$0xff]  ;;  %v1699_v59 = vld [vmem:[#allocation2 + $0x42] sm:$0xff]  ;;  %v1710_v26 = vld [vmem:[#allocation2 + $0x9a] sm:$0xff] }
  0x2c   : > { %3989 = vmatpush3.bf16.msra.mxu0 %v4433_v60  ;;  %v1700_v60 = vld [vmem:[#allocation2 + $0x4a] sm:$0xff]  ;;  %v432_v63 = vld [vmem:[#allocation2 + $0xc1] sm:$0xff]  ;;  %v3566_v1 = vld [vmem:[%s4606_s25 + $0x78] sm:$0xff]  }
  0x2d   : > { %3990 = vmatprep.subr.bf16.mxu0 %v4435_v0  ;;  %3813 = vmatpush3.bf16.msra.mxu1 %v4437_v61  ;;  %v431_v61 = vld [vmem:[#allocation2 + $0xb9] sm:$0xff]  ;;  %v4448_v62 = vld [vmem:[%s5356_s1 + $0x190] sm:$0xff]   ;;  %v3546_v3 = vunpack.c.l.bf16 %v3566_v1  ;;  %v1703_v12 = vld [vmem:[#allocation2 + $0x62] sm:$0xff] }
  0x2e   : > { %3787 = vmatmul.mubr.bf16.gmra.mrb[4].mxu1 %v1443_v53  ;;  %3814 = vmatprep.subr.bf16.mxu1 %v4440_v4  ;;  %v4700_v53 = vld [vmem:[%s5356_s1 + $0x80] sm:$0xff]   ;;  %v433_v2 = vld [vmem:[#allocation2 + $0xc9] sm:$0xff]  ;;  %v4720_v6 = vpack.c.bf16 %v431_v61, %v430_v58  ;;  %v434_v11 = vld [vmem:[#allocation2 + $0xd1] sm:$0xff] }
  0x2f   : > { %3963 = vmatmul.mubr.bf16.gmra.mrb[4].mxu0 %v1444_v7  ;;  %3790 = vmatprep.mubr.bf16.mxu1 %v1444_v7  ;;  %346 = vst [vmem:[#allocation2 + $0xf0] sm:$0xff] %v3546_v3  ;;  %v4722_v7 = vpack.c.bf16 %v1700_v60, %v1699_v59  ;;  %v1704_v14 = vld [vmem:[#allocation2 + $0x6a] sm:$0xff]  ;;  %v1705_v15 = vld [vmem:[#allocation2 + $0x72] sm:$0xff]  ;;  %v4452_v20 = vld [vmem:[%s4606_s25] sm:$0xff] }
  0x30   : > { %3991 = vmatpush3.bf16.msra.mxu0 %v4435_v0  ;;  %3966 = vmatprep.mubr.bf16.mxu0 %v1445_v8  ;;  %v1701_v0 = vld [vmem:[#allocation2 + $0x52] sm:$0xff]  ;;  %v4740_v19 = vpack.c.bf16 %v1704_v14, %v1703_v12  ;;  %v1707_v23 = vld [vmem:[#allocation2 + $0x82] sm:$0xff]  ;;  %v1712_v36 = vld [vmem:[#allocation2 + $0xaa] sm:$0xff] }
  0x31   : > { %3992 = vmatprep.subr.bf16.mxu0 %v4436_v10  ;;  %3815 = vmatpush3.bf16.msra.mxu1 %v4440_v4  ;;  %v3547_v4 = vunpack.c.h.bf16 %v3566_v1  ;;  %v4726_v9 = vpack.c.bf16 %v1702_v5, %v1701_v0  ;;  %v1709_v25 = vld [vmem:[#allocation2 + $0x92] sm:$0xff]  ;;  %v1711_v34 = vld [vmem:[#allocation2 + $0xa2] sm:$0xff]  ;;  %v1718_v49 = vld [vmem:[#allocation2 + $0xda] sm:$0xff] }
  0x32   : > { %3816 = vmatprep.subr.bf16.mxu1 %v4443_v13  ;;  %v4758_v30 = vld [vmem:[%s4606_s25 + $0x10] sm:$0xff]  ;;  %v4760_v31 = vpack.c.bf16 %v1710_v26, %v1709_v25  ;;  %v4466_v33 = vld [vmem:[%s5356_s1 + $0x1b8] sm:$0xff]   ;;  %v4781_v42 = vpack.c.bf16 %v1712_v36, %v1711_v34  ;;  %v4459_v43 = vld [vmem:[%s4606_s25 + $0x20] sm:$0xff] }
  0x33   : > { %347 = vst [vmem:[#allocation2 + $0xf8] sm:$0xff] %v3547_v4  ;;  %v1713_v37 = vld [vmem:[#allocation2 + $0xb2] sm:$0xff]  ;;  %v1715_v46 = vld [vmem:[#allocation2 + $0xc2] sm:$0xff] }
  0x34   : > { %3993 = vmatpush3.bf16.msra.mxu0 %v4436_v10  ;;  %v4451_v10 = vld [vmem:[%s5356_s1 + $0x198] sm:$0xff]   ;;  %v4471_v50 = vld [vmem:[%s5356_s1 + $0xa0] sm:$0xff]   ;;  %v4461_v51 = vld [vmem:[%s4606_s25 + $0x28] sm:$0xff] }
  0x35   : > { %3994 = vmatprep.subr.bf16.mxu0 %v4438_v16  ;;  %3817 = vmatpush3.bf16.msra.mxu1 %v4443_v13  ;;  %v435_v13 = vld [vmem:[#allocation2 + $0xd9] sm:$0xff]  ;;  %v4475_v59 = vld [vmem:[%s5356_s1 + $0xa8] sm:$0xff]   ;;  %v2878_v26 = vld [vmem:[%s5358_s3 + $0x10] sm:$0xff] }
  0x36   : > { %3791 = vmatmul.mubr.bf16.gmra.mrb[8].mxu1 %v1445_v8  ;;  %3818 = vmatprep.subr.bf16.mxu1 %v4445_v22  ;;  %v4724_v8 = vpack.c.bf16 %v433_v2, %v432_v63  ;;  %v4738_v18 = vpack.c.bf16 %v435_v13, %v434_v11  ;;  %v1717_v48 = vld [vmem:[#allocation2 + $0xd2] sm:$0xff]  ;;  %v1719_v60 = vld [vmem:[#allocation2 + $0xe2] sm:$0xff]  ;;  %v1720_v61 = vld [vmem:[#allocation2 + $0xea] sm:$0xff] }
  0x37   : > { %3967 = vmatmul.mubr.bf16.gmra.mrb[8].mxu0 %v1446_v24  ;;  %3794 = vmatprep.mubr.bf16.mxu1 %v1446_v24  ;;  %v1708_v24 = vld [vmem:[#allocation2 + $0x8a] sm:$0xff]  ;;  %v4799_v58 = vpack.c.bf16 %v1718_v49, %v1717_v48  ;;  %v4465_v63 = vld [vmem:[%s4606_s25 + $0x38] sm:$0xff]  ;;  %v4810_v0 = vpack.c.bf16 %v1720_v61, %v1719_v60  ;;  %v4468_v1 = vld [vmem:[%s4606_s25 + $0x40] sm:$0xff] }
  0x38   : > { %3995 = vmatpush3.bf16.msra.mxu0 %v4438_v16  ;;  %3970 = vmatprep.mubr.bf16.mxu0 %v1447_v27  ;;  %v1706_v16 = vld [vmem:[#allocation2 + $0x7a] sm:$0xff]  ;;  %v4472_v11 = vld [vmem:[%s4606_s25 + $0x50] sm:$0xff]  ;;  %v4473_v12 = vld [vmem:[%s5356_s1 + $0x1c8] sm:$0xff]  }
  0x39   : > { %3996 = vmatprep.subr.bf16.mxu0 %v4439_v29  ;;  %3819 = vmatpush3.bf16.msra.mxu1 %v4445_v22  ;;  %v4743_v21 = vpack.c.bf16 %v1706_v16, %v1705_v15  ;;  %v4458_v22 = vld [vmem:[%s5356_s1 + $0x1a8] sm:$0xff]   ;;  %v3567_v2 = vld [vmem:[%s4606_s25 + $0x80] sm:$0xff]   ;;  %v4480_v4 = vld [vmem:[%s5356_s1 + $0xb8] sm:$0xff]  }
  0x3a   : > { %3820 = vmatprep.subr.bf16.mxu1 %v4447_v32  ;;  %v3550_v3 = vunpack.c.l.bf16 %v3567_v2  ;;  %v4483_v5 = vld [vmem:[%s5356_s1 + $0xc0] sm:$0xff]   ;;  %v4476_v13 = vld [vmem:[%s5356_s1 + $0x1d0] sm:$0xff]   ;;  %v4474_v14 = vld [vmem:[%s4606_s25 + $0x58] sm:$0xff] }
  0x3b   : > { %v4477_v15 = vld [vmem:[%s4606_s25 + $0x60] sm:$0xff]  ;;  %v4481_v16 = vld [vmem:[%s5356_s1 + $0x1d8] sm:$0xff]   ;;  %v4484_v25 = vld [vmem:[%s5356_s1 + $0x1e8] sm:$0xff]  }
  0x3c   : > { %3997 = vmatpush3.bf16.msra.mxu0 %v4439_v29  ;;  %v4755_v29 = vpack.c.bf16 %v1708_v24, %v1707_v23  ;;  %348 = vst [vmem:[#allocation2 + $0x100] sm:$0xff] %v3550_v3  ;;  %v4478_v23 = vld [vmem:[%s4606_s25 + $0x68] sm:$0xff]  ;;  %v2879_v34 = vld [vmem:[%s5358_s3 + $0x18] sm:$0xff]  ;;  %v2888_v60 = vld [vmem:[%s5358_s3 + $0x60] sm:$0xff] }
  0x3d   : > { %3998 = vmatprep.subr.bf16.mxu0 %v4441_v35  ;;  %3821 = vmatpush3.bf16.msra.mxu1 %v4447_v32  ;;  %v4460_v32 = vld [vmem:[%s5356_s1 + $0x88] sm:$0xff]   ;;  %v4491_v36 = vld [vmem:[%s5356_s1 + $0xd8] sm:$0xff]  }
  0x3e   : > { %3795 = vmatmul.mubr.bf16.gmra.mrb[12].mxu1 %v1447_v27  ;;  %3822 = vmatprep.subr.bf16.mxu1 %v4449_v38  ;;  %v4462_v27 = vld [vmem:[%s5356_s1 + $0x1b0] sm:$0xff]   ;;  %v2887_v49 = vld [vmem:[%s5358_s3 + $0x58] sm:$0xff] }
  0x3f   : > { %3971 = vmatmul.mubr.bf16.gmra.mrb[12].mxu0 %v1448_v39  ;;  %3798 = vmatprep.mubr.bf16.mxu1 %v1448_v39  ;;  %v4463_v39 = vld [vmem:[%s5356_s1 + $0x90] sm:$0xff]  }
  0x40   : > { %3999 = vmatpush3.bf16.msra.mxu0 %v4441_v35  ;;  %4002 = vmatprep.mubr.bf16.mxu0 %v4683_v40  ;;  %v4772_v35 = vld [vmem:[%s4606_s25 + $0x18] sm:$0xff]  ;;  %v2254_v48 = vld [vmem:[#allocation2 + $0x29] sm:$0xff] }
  0x41   : > { %4000 = vmatprep.subr.bf16.mxu0 %v4442_v41  ;;  %3823 = vmatpush3.bf16.msra.mxu1 %v4449_v38  ;;  %v1714_v38 = vld [vmem:[#allocation2 + $0xba] sm:$0xff]  ;;  %v2255_v61 = vld [vmem:[#allocation2 + $0x31] sm:$0xff] }
  0x42   : > { %3824 = vmatprep.subr.bf16.mxu1 %v4450_v45  ;;  %v4784_v44 = vpack.c.bf16 %v1714_v38, %v1713_v37  ;;  %v2881_v37 = vld [vmem:[%s5358_s3 + $0x28] sm:$0xff]  ;;  %v2880_v38 = vld [vmem:[%s5358_s3 + $0x20] sm:$0xff] }
  0x44   : > { %4001 = vmatpush3.bf16.msra.mxu0 %v4442_v41  ;;  %v4470_v41 = vld [vmem:[%s5356_s1 + $0x1c0] sm:$0xff]  }
  0x45   : > { %4030 = vmatprep.subr.bf16.mxu0 %v4444_v47  ;;  %3825 = vmatpush3.bf16.msra.mxu1 %v4450_v45  ;;  %v4467_v45 = vld [vmem:[%s5356_s1 + $0x98] sm:$0xff]  }
  0x46   : > { %3799 = vmatmul.mubr.bf16.gmra.mrb[16].mxu1 %v4695_v52  ;;  %3854 = vmatprep.subr.bf16.mxu1 %v4700_v53 }
  0x47   : > { %4003 = vmatmul.mubr.bf16.vlgmr.msra.gmra.mrb[0].mxu0 %v4702_v54  ;;  %3802 = vmatprep.mubr.bf16.mxu1 %v4704_v55 }
  0x48   : > { %4031 = vmatpush3.bf16.msra.mxu0 %v4444_v47  ;;  %4006 = vmatprep.mubr.bf16.mxu0 %v4706_v56  ;;  %v1716_v47 = vld [vmem:[#allocation2 + $0xca] sm:$0xff] }
  0x49   : > { %4032 = vmatprep.subr.bf16.mxu0 %v4446_v57 }
  0x4c   : > { %4033 = vmatpush3.bf16.msra.mxu0 %v4446_v57  ;;  %v4464_v57 = vld [vmem:[%s4606_s25 + $0x30] sm:$0xff] }
  0x4d   : > { %4034 = vmatprep.subr.bf16.mxu0 %v4448_v62 }
  0x4e   : > { %3803 = vmatmul.mubr.bf16.gmra.mrb[20].mxu1 %v4720_v6 }
  0x4f   : > { %4007 = vmatmul.mubr.bf16.gmra.mrb[4].mxu0 %v4722_v7  ;;  %3806 = vmatprep.mubr.bf16.mxu1 %v4724_v8 }
  0x50   : > { %4010 = vmatprep.mubr.bf16.mxu0 %v4726_v9  ;;  %4035 = vmatpush3.bf16.msra.mxu0 %v4448_v62  ;;  %v4479_v62 = vld [vmem:[%s5356_s1 + $0xb0] sm:$0xff]  }
  0x51   : > { %4036 = vmatprep.subr.bf16.mxu0 %v4451_v10 }
  0x54   : > { %4037 = vmatpush3.bf16.msra.mxu0 %v4451_v10  ;;  %v4469_v10 = vld [vmem:[%s4606_s25 + $0x48] sm:$0xff] }
  0x55   : > { %4038 = vmatprep.subr.bf16.mxu0 %v4454_v17 }
  0x56   : > { %3807 = vmatmul.mubr.bf16.gmra.mrb[24].mxu1 %v4738_v18 }
  0x57   : > { %4011 = vmatmul.mubr.bf16.gmra.mrb[8].mxu0 %v4740_v19  ;;  %3826 = vmatprep.mubr.bf16.mxu1 %v4452_v20  ;;  %v854_v20 = vld [vmem:[#allocation2 + $0xa] sm:$0xff] }
  0x58   : > { %4014 = vmatprep.mubr.bf16.mxu0 %v4743_v21  ;;  %4039 = vmatpush3.bf16.msra.mxu0 %v4454_v17  ;;  %v853_v17 = vld [vmem:[#allocation2 + $0x2] sm:$0xff] }
  0x59   : > { %4040 = vmatprep.subr.bf16.mxu0 %v4458_v22  ;;  %v881_v24 = vpack.c.bf16 %v854_v20, %v853_v17  ;;  %v2894_v17 = vld [vmem:[%s5358_s3 + $0x90] sm:$0xff] }
  0x5c   : > { %4041 = vmatpush3.bf16.msra.mxu0 %v4458_v22  ;;  %v4482_v22 = vld [vmem:[%s5356_s1 + $0x1e0] sm:$0xff]  }
  0x5d   : > { %4042 = vmatprep.subr.bf16.mxu0 %v4462_v27 }
  0x5e   : > { %3827 = vmatmul.mubr.bf16.vlgmr.msra.gmra.mrb[0].mxu1 %v4453_v28  ;;  %v4486_v28 = vld [vmem:[%s5356_s1 + $0x1f0] sm:$0xff]  }
  0x5f   : > { %4015 = vmatmul.mubr.bf16.gmra.mrb[12].mxu0 %v4755_v29  ;;  %3830 = vmatprep.mubr.bf16.mxu1 %v4758_v30 }
  0x60   : > { %4018 = vmatprep.mubr.bf16.mxu0 %v4760_v31  ;;  %3855 = vmatpush3.bf16.msra.mxu1 %v4700_v53  ;;  %v4796_v53 = vpack.c.bf16 %v1716_v47, %v1715_v46  ;;  %v2884_v46 = vld [vmem:[%s5358_s3 + $0x40] sm:$0xff] }
  0x61   : > { %3856 = vmatprep.subr.bf16.mxu1 %v4460_v32  ;;  %4043 = vmatpush3.bf16.msra.mxu0 %v4462_v27  ;;  %v2876_v27 = vld [vmem:[%s5358_s3] sm:$0xff] }
  0x62   : > { %4044 = vmatprep.subr.bf16.mxu0 %v4466_v33  ;;  %v2253_v47 = vld [vmem:[#allocation2 + $0x21] sm:$0xff] }
  0x64   : > { %3857 = vmatpush3.bf16.msra.mxu1 %v4460_v32  ;;  %v4485_v32 = vld [vmem:[%s5356_s1 + $0xc8] sm:$0xff]  }
  0x65   : > { %3858 = vmatprep.subr.bf16.mxu1 %v4463_v39  ;;  %4045 = vmatpush3.bf16.msra.mxu0 %v4466_v33  ;;  %v4490_v33 = vld [vmem:[%s5356_s1 + $0x1f8] sm:$0xff]  }
  0x66   : > { %3831 = vmatmul.mubr.bf16.gmra.mrb[4].mxu1 %v4772_v35  ;;  %4074 = vmatprep.subr.bf16.mxu0 %v4470_v41 }
  0x67   : > { %4019 = vmatmul.mubr.bf16.gmra.mrb[16].mxu0 %v4781_v42  ;;  %3834 = vmatprep.mubr.bf16.mxu1 %v4459_v43 }
  0x68   : > { %4022 = vmatprep.mubr.bf16.mxu0 %v4784_v44  ;;  %3859 = vmatpush3.bf16.msra.mxu1 %v4463_v39  ;;  %v2883_v39 = vld [vmem:[%s5358_s3 + $0x38] sm:$0xff] }
  0x69   : > { %3860 = vmatprep.subr.bf16.mxu1 %v4467_v45 }
  0x6c   : > { %3861 = vmatpush3.bf16.msra.mxu1 %v4467_v45  ;;  %v2885_v45 = vld [vmem:[%s5358_s3 + $0x48] sm:$0xff] }
  0x6d   : > { %3862 = vmatprep.subr.bf16.mxu1 %v4471_v50 }
  0x6e   : > { %3835 = vmatmul.mubr.bf16.gmra.mrb[8].mxu1 %v4461_v51 }
  0x6f   : > { %4023 = vmatmul.mubr.bf16.gmra.mrb[20].mxu0 %v4796_v53  ;;  %3838 = vmatprep.mubr.bf16.mxu1 %v4464_v57 }
  0x70   : > { %4026 = vmatprep.mubr.bf16.mxu0 %v4799_v58  ;;  %3863 = vmatpush3.bf16.msra.mxu1 %v4471_v50  ;;  %v2886_v50 = vld [vmem:[%s5358_s3 + $0x50] sm:$0xff] }
  0x71   : > { %3864 = vmatprep.subr.bf16.mxu1 %v4475_v59 }
  0x74   : > { %3865 = vmatpush3.bf16.msra.mxu1 %v4475_v59  ;;  %v2889_v59 = vld [vmem:[%s5358_s3 + $0x68] sm:$0xff] }
  0x75   : > { %3866 = vmatprep.subr.bf16.mxu1 %v4479_v62 }
  0x76   : > { %3839 = vmatmul.mubr.bf16.gmra.mrb[12].mxu1 %v4465_v63 }
  0x77   : > { %4027 = vmatmul.mubr.bf16.gmra.mrb[24].mxu0 %v4810_v0  ;;  %3842 = vmatprep.mubr.bf16.mxu1 %v4468_v1 }
  0x78   : > { %4046 = vmatprep.mubr.bf16.mxu0 %v4758_v30  ;;  %3867 = vmatpush3.bf16.msra.mxu1 %v4479_v62  ;;  %v4521_v30 = vmov 0   ;;  %v2256_v62 = vld [vmem:[#allocation2 + $0x39] sm:$0xff] }
  0x79   : > { %3868 = vmatprep.subr.bf16.mxu1 %v4480_v4  ;;  %4415 = vset.pattern.permute.xlu1 %v4521_v30  ;;  %v2282_v2 = vpack.c.bf16 %v2256_v62, %v2255_v61  ;;  %v1146_v61 = vld [vmem:[#allocation2 + $0x78] sm:$0xff]  ;;  %v2277_v62 = vld [vmem:[#allocation2 + $0xe1] sm:$0xff] }
  0x7a   : > { %4414 = vset.pattern.permute.xlu0 %v4521_v30  ;;  %2916 = vperm.xlu1 %4415, %v2878_v26   ;;  %v2264_v26 = vld [vmem:[#allocation2 + $0x79] sm:$0xff]  ;;  %v2266_v30 = vld [vmem:[#allocation2 + $0x89] sm:$0xff] }
  0x7b   : > { %2906 = vperm.xlu0 %4414, %v2876_v27   ;;  %v1133_v27 = vld [vmem:[#allocation2 + $0x10] sm:$0xff] }
  0x7c   : > { %3869 = vmatpush3.bf16.msra.mxu1 %v4480_v4  ;;  %v4494_v4 = vld [vmem:[%s5356_s1 + $0x208] sm:$0xff]  }
  0x7d   : > { %3898 = vmatprep.subr.bf16.mxu1 %v4483_v5 }
  0x7e   : > { %3843 = vmatmul.mubr.bf16.gmra.mrb[16].mxu1 %v4469_v10  ;;  %2921 = vperm.xlu1 %4415, %v2879_v34  }
  0x7f   : > { %4047 = vmatmul.mubr.bf16.vlgmr.msra.gmra.mrb[0].mxu0 %v4772_v35  ;;  %3846 = vmatprep.mubr.bf16.mxu1 %v4472_v11  ;;  %v2877_v35 = vld [vmem:[%s5358_s3 + $0x8] sm:$0xff] }
  0x80   : > { %4075 = vmatpush3.bf16.msra.mxu0 %v4470_v41  ;;  %4050 = vmatprep.mubr.bf16.mxu0 %v4459_v43  ;;  %v4488_v41 = vld [vmem:[%s4606_s25 + $0x70] sm:$0xff]  ;;  %v4495_v43 = vld [vmem:[%s5356_s1 + $0xe8] sm:$0xff]  }
  0x81   : > { %4076 = vmatprep.subr.bf16.mxu0 %v4473_v12  ;;  %2911 = vperm.xlu0 %4414, %v2877_v35   ;;  %v2898_v35 = vld [vmem:[%s5358_s3 + $0xb0] sm:$0xff] }
  0x82   : > { %2931 = vperm.xlu1 %4415, %v2881_v37   ;;  %v1135_v37 = vld [vmem:[#allocation2 + $0x20] sm:$0xff] }
  0x84   : > { %4077 = vmatpush3.bf16.msra.mxu0 %v4473_v12  ;;  %v2259_v12 = vld [vmem:[#allocation2 + $0x51] sm:$0xff] }
  0x85   : > { %4078 = vmatprep.subr.bf16.mxu0 %v4476_v13  ;;  %2926 = vperm.xlu0 %4414, %v2880_v38   ;;  %v1136_v38 = vld [vmem:[#allocation2 + $0x28] sm:$0xff] }
  0x86   : > { %3847 = vmatmul.mubr.bf16.gmra.mrb[20].mxu1 %v4474_v14  ;;  %2941 = vperm.xlu1 %4415, %v2883_v39   ;;  %v1137_v39 = vld [vmem:[#allocation2 + $0x30] sm:$0xff] }
  0x87   : > { %4051 = vmatmul.mubr.bf16.gmra.mrb[4].mxu0 %v4461_v51  ;;  %3850 = vmatprep.mubr.bf16.mxu1 %v4477_v15  ;;  %v2281_v51 = vpack.c.bf16 %v2254_v48, %v2253_v47  ;;  %v4503_v47 = vld [vmem:[%s5356_s1 + $0x238] sm:$0xff]   ;;  %v1139_v48 = vld [vmem:[#allocation2 + $0x40] sm:$0xff] }
  0x88   : > { %4054 = vmatprep.mubr.bf16.mxu0 %v4464_v57  ;;  %4079 = vmatpush3.bf16.msra.mxu0 %v4476_v13  ;;  %v4498_v57 = vld [vmem:[%s5356_s1 + $0xf8] sm:$0xff]  }
  0x89   : > { %4080 = vmatprep.subr.bf16.mxu0 %v4481_v16  ;;  %v2260_v13 = vld [vmem:[#allocation2 + $0x59] sm:$0xff] }
  0x8a   : > { %2951 = vperm.xlu1 %4415, %v2885_v45  }
  0x8c   : > { %4081 = vmatpush3.bf16.msra.mxu0 %v4481_v16  ;;  %v2284_v16 = vpack.c.bf16 %v2260_v13, %v2259_v12  ;;  %v2533_v12 = vld [vmem:[#allocation2 + $0x22] sm:$0xff]  ;;  %v2534_v13 = vld [vmem:[#allocation2 + $0x2a] sm:$0xff] }
  0x8d   : > { %4082 = vmatprep.subr.bf16.mxu0 %v4482_v22 }
  0x8e   : > { %3851 = vmatmul.mubr.bf16.gmra.mrb[24].mxu1 %v4478_v23  ;;  %2961 = vperm.xlu1 %4415, %v2887_v49   ;;  %v1141_v49 = vld [vmem:[#allocation2 + $0x50] sm:$0xff] }
  0x8f   : > { %4055 = vmatmul.mubr.bf16.gmra.mrb[8].mxu0 %v4465_v63  ;;  %3870 = vmatprep.mubr.bf16.mxu1 %v881_v24  ;;  %v2257_v63 = vld [vmem:[#allocation2 + $0x41] sm:$0xff]  ;;  %v2263_v24 = vld [vmem:[#allocation2 + $0x71] sm:$0xff] }
  0x90   : > { %4058 = vmatprep.mubr.bf16.mxu0 %v4468_v1  ;;  %4083 = vmatpush3.bf16.msra.mxu0 %v4482_v22  ;;  %v2258_v1 = vld [vmem:[#allocation2 + $0x49] sm:$0xff]  ;;  %v4499_v22 = vld [vmem:[%s5356_s1 + $0x218] sm:$0xff]  }
  0x91   : > { %4084 = vmatprep.subr.bf16.mxu0 %v4484_v25  ;;  %v2283_v3 = vpack.c.bf16 %v2258_v1, %v2257_v63  ;;  %v2278_v63 = vld [vmem:[#allocation2 + $0xe9] sm:$0xff]  ;;  %v4507_v1 = vld [vmem:[%s5356_s1 + $0x118] sm:$0xff]  }
  0x92   : > { %2971 = vperm.xlu1 %4415, %v2889_v59   ;;  %v1144_v59 = vld [vmem:[#allocation2 + $0x68] sm:$0xff] }
  0x94   : > { %4085 = vmatpush3.bf16.msra.mxu0 %v4484_v25  ;;  %v2896_v25 = vld [vmem:[%s5358_s3 + $0xa0] sm:$0xff] }
  0x95   : > { %4086 = vmatprep.subr.bf16.mxu0 %v4486_v28 }
  0x96   : > { %3871 = vmatmul.mubr.bf16.vlgmr.msra.gmra.mrb[0].mxu1 %v4683_v40  ;;  %v4487_v40 = vld [vmem:[%s5356_s1 + $0xd0] sm:$0xff]  }
  0x97   : > { %4059 = vmatmul.mubr.bf16.gmra.mrb[12].mxu0 %v4469_v10  ;;  %3874 = vmatprep.mubr.bf16.mxu1 %v4702_v54  ;;  %v4872_v54 = vld [vmem:[%s5356_s1 + $0x200] sm:$0xff]   ;;  %v2893_v10 = vld [vmem:[%s5358_s3 + $0x88] sm:$0xff] }
  0x98   : > { %4062 = vmatprep.mubr.bf16.mxu0 %v4472_v11  ;;  %3899 = vmatpush3.bf16.msra.mxu1 %v4483_v5  ;;  %v4940_v5 = vld [vmem:[%s5356_s1 + $0x100] sm:$0xff]  }
  0x99   : > { %3900 = vmatprep.subr.bf16.mxu1 %v4485_v32  ;;  %4087 = vmatpush3.bf16.msra.mxu0 %v4486_v28  ;;  %v2892_v11 = vld [vmem:[%s5358_s3 + $0x80] sm:$0xff]  ;;  %v1134_v28 = vld [vmem:[#allocation2 + $0x18] sm:$0xff] }
  0x9a   : > { %4088 = vmatprep.subr.bf16.mxu0 %v4490_v33  ;;  %v1161_v34 = vpack.c.bf16 %v1134_v28, %v1133_v27  ;;  %v2538_v27 = vld [vmem:[#allocation2 + $0x4a] sm:$0xff]  ;;  %v4511_v28 = vld [vmem:[%s5356_s1 + $0x138] sm:$0xff]  }
  0x9c   : > { %3901 = vmatpush3.bf16.msra.mxu1 %v4485_v32  ;;  %v4500_v32 = vld [vmem:[%s5356_s1 + $0x220] sm:$0xff]  }
  0x9d   : > { %3902 = vmatprep.subr.bf16.mxu1 %v4487_v40  ;;  %4089 = vmatpush3.bf16.msra.mxu0 %v4490_v33  ;;  %v2286_v33 = vpack.c.bf16 %v2264_v26, %v2263_v24  ;;  %v1153_v24 = vld [vmem:[#allocation2 + $0xb0] sm:$0xff]  ;;  %v2537_v26 = vld [vmem:[#allocation2 + $0x42] sm:$0xff] }
  0x9e   : > { %3875 = vmatmul.mubr.bf16.gmra.mrb[4].mxu1 %v4706_v56  ;;  %4118 = vmatprep.subr.bf16.mxu0 %v4872_v54  ;;  %v4493_v56 = vld [vmem:[%s5356_s1 + $0xe0] sm:$0xff]  }
  0x9f   : > { %4063 = vmatmul.mubr.bf16.gmra.mrb[16].mxu0 %v4474_v14  ;;  %3878 = vmatprep.mubr.bf16.mxu1 %v4722_v7  ;;  %v2882_v7 = vld [vmem:[%s5358_s3 + $0x30] sm:$0xff]  ;;  %v2261_v14 = vld [vmem:[#allocation2 + $0x61] sm:$0xff] }
  0xa0   : > { %4066 = vmatprep.mubr.bf16.mxu0 %v4477_v15  ;;  %3903 = vmatpush3.bf16.msra.mxu1 %v4487_v40  ;;  %v2262_v15 = vld [vmem:[#allocation2 + $0x69] sm:$0xff] }
  0xa1   : > { %3904 = vmatprep.subr.bf16.mxu1 %v4491_v36  ;;  %2936 = vperm.xlu0 %4414, %v2882_v7   ;;  %v2285_v20 = vpack.c.bf16 %v2262_v15, %v2261_v14  ;;  %v1138_v7 = vld [vmem:[#allocation2 + $0x38] sm:$0xff] }
  0xa2   : > { %v1163_v45 = vpack.c.bf16 %v1138_v7, %v1137_v39 }
  0xa4   : > { %3905 = vmatpush3.bf16.msra.mxu1 %v4491_v36  ;;  %v2901_v36 = vld [vmem:[%s5358_s3 + $0xc8] sm:$0xff] }
  0xa5   : > { %3906 = vmatprep.subr.bf16.mxu1 %v4493_v56  ;;  %2946 = vperm.xlu0 %4414, %v2884_v46   ;;  %v2902_v46 = vld [vmem:[%s5358_s3 + $0xd0] sm:$0xff] }
  0xa6   : > { %3879 = vmatmul.mubr.bf16.gmra.mrb[8].mxu1 %v4726_v9  ;;  %v4497_v9 = vld [vmem:[%s5356_s1 + $0xf0] sm:$0xff]  }
  0xa7   : > { %4067 = vmatmul.mubr.bf16.gmra.mrb[20].mxu0 %v4478_v23  ;;  %3882 = vmatprep.mubr.bf16.mxu1 %v4740_v19  ;;  %v4489_v19 = vld [vmem:[%s4606_s25 + $0x78] sm:$0xff]  ;;  %v2897_v23 = vld [vmem:[%s5358_s3 + $0xa8] sm:$0xff] }
  0xa8   : > { %4070 = vmatprep.mubr.bf16.mxu0 %v4488_v41  ;;  %3907 = vmatpush3.bf16.msra.mxu1 %v4493_v56  ;;  %v2900_v56 = vld [vmem:[%s5358_s3 + $0xc0] sm:$0xff]  ;;  %v1162_v41 = vpack.c.bf16 %v1136_v38, %v1135_v37  ;;  %v2542_v38 = vld [vmem:[#allocation2 + $0x6a] sm:$0xff] }
  0xa9   : > { %3908 = vmatprep.subr.bf16.mxu1 %v4495_v43  ;;  %2956 = vperm.xlu0 %4414, %v2886_v50   ;;  %v4505_v50 = vld [vmem:[%s5356_s1 + $0x108] sm:$0xff]  }
  0xaa   : > { %v2541_v37 = vld [vmem:[#allocation2 + $0x62] sm:$0xff] }
  0xac   : > { %3909 = vmatpush3.bf16.msra.mxu1 %v4495_v43  ;;  %v2903_v43 = vld [vmem:[%s5358_s3 + $0xd8] sm:$0xff] }
  0xad   : > { %3910 = vmatprep.subr.bf16.mxu1 %v4497_v9  ;;  %2966 = vperm.xlu0 %4414, %v2888_v60   ;;  %v1145_v60 = vld [vmem:[#allocation2 + $0x70] sm:$0xff] }
  0xae   : > { %3883 = vmatmul.mubr.bf16.gmra.mrb[12].mxu1 %v4743_v21  ;;  %v2891_v21 = vld [vmem:[%s5358_s3 + $0x78] sm:$0xff] }
  0xaf   : > { %4071 = vmatmul.mubr.bf16.gmra.mrb[24].mxu0 %v4489_v19  ;;  %3886 = vmatprep.mubr.bf16.mxu1 %v4755_v29  ;;  %v2890_v29 = vld [vmem:[%s5358_s3 + $0x70] sm:$0xff]  ;;  %v1142_v19 = vld [vmem:[#allocation2 + $0x58] sm:$0xff] }
  0xb0   : > { %4090 = vmatprep.mubr.bf16.mxu0 %v2281_v51  ;;  %3911 = vmatpush3.bf16.msra.mxu1 %v4497_v9  ;;  %v1140_v9 = vld [vmem:[#allocation2 + $0x48] sm:$0xff] }
  0xb1   : > { %3912 = vmatprep.subr.bf16.mxu1 %v4498_v57  ;;  %2981 = vperm.xlu1 %4415, %v2891_v21   ;;  %v1164_v51 = vpack.c.bf16 %v1140_v9, %v1139_v48  ;;  %v2545_v48 = vld [vmem:[#allocation2 + $0x82] sm:$0xff]  ;;  %v2546_v9 = vld [vmem:[#allocation2 + $0x8a] sm:$0xff] }
  0xb2   : > { %2976 = vperm.xlu0 %4414, %v2890_v29   ;;  %v5017_v29 = vpack.c.bf16 %v2278_v63, %v2277_v62  ;;  %v1434_v62 = vld [vmem:[#allocation2 + $0xb9] sm:$0xff]  ;;  %v2549_v63 = vld [vmem:[#allocation2 + $0xa2] sm:$0xff] }
  0xb4   : > { %3913 = vmatpush3.bf16.msra.mxu1 %v4498_v57  ;;  %v1165_v57 = vpack.c.bf16 %v1142_v19, %v1141_v49  ;;  %v4512_v49 = vld [vmem:[#allocation2 + $0xe8] sm:$0xff] }
  0xb5   : > { %4162 = vmatprep.subr.bf16.mxu1 %v4940_v5  ;;  %2991 = vperm.xlu1 %4415, %v2893_v10   ;;  %v1149_v10 = vld [vmem:[#allocation2 + $0x90] sm:$0xff] }
  0xb6   : > { %3887 = vmatmul.mubr.bf16.gmra.mrb[16].mxu1 %v4760_v31  ;;  %v4496_v31 = vld [vmem:[%s5356_s1 + $0x210] sm:$0xff]   ;;  %2986 = vperm.xlu0 %4414, %v2892_v11   ;;  %v1150_v11 = vld [vmem:[#allocation2 + $0x98] sm:$0xff] }
  0xb7   : > { %4091 = vmatmul.mubr.bf16.vlgmr.msra.gmra.mrb[0].mxu0 %v2282_v2  ;;  %3890 = vmatprep.mubr.bf16.mxu1 %v4781_v42  ;;  %v2895_v42 = vld [vmem:[%s5358_s3 + $0x98] sm:$0xff]  ;;  %v1167_v2 = vpack.c.bf16 %v1146_v61, %v1145_v60 }
  0xb8   : > { %4119 = vmatpush3.bf16.msra.mxu0 %v4872_v54  ;;  %4094 = vmatprep.mubr.bf16.mxu0 %v2283_v3  ;;  %v4501_v54 = vld [vmem:[%s5356_s1 + $0x228] sm:$0xff]   ;;  %v2548_v60 = vld [vmem:[#allocation2 + $0x9a] sm:$0xff]  ;;  %v1433_v61 = vld [vmem:[#allocation2 + $0xb1] sm:$0xff] }
  0xb9   : > { %4120 = vmatprep.subr.bf16.mxu0 %v4494_v4  ;;  %3001 = vperm.xlu1 %4415, %v2895_v42   ;;  %v1148_v3 = vld [vmem:[#allocation2 + $0x88] sm:$0xff]  ;;  %v2561_v42 = vpack.c.bf16 %v2534_v13, %v2533_v12  ;;  %v1438_v12 = vld [vmem:[#allocation2 + $0xd9] sm:$0xff] }
  0xba   : > { %2996 = vperm.xlu0 %4414, %v2894_v17   ;;  %v1151_v17 = vld [vmem:[#allocation2 + $0xa0] sm:$0xff] }
  0xbb   : > { %v2553_v13 = vld [vmem:[#allocation2 + $0xc2] sm:$0xff] }
  0xbc   : > { %4121 = vmatpush3.bf16.msra.mxu0 %v4494_v4  ;;  %v2279_v4 = vld [vmem:[#allocation2 + $0xf1] sm:$0xff] }
  0xbd   : > { %4122 = vmatprep.subr.bf16.mxu0 %v4496_v31  ;;  %3011 = vperm.xlu1 %4415, %v2897_v23   ;;  %v2536_v23 = vld [vmem:[#allocation2 + $0x3a] sm:$0xff] }
  0xbe   : > { %3891 = vmatmul.mubr.bf16.gmra.mrb[20].mxu1 %v4784_v44  ;;  %v2265_v44 = vld [vmem:[#allocation2 + $0x81] sm:$0xff]  ;;  %3006 = vperm.xlu0 %4414, %v2896_v25   ;;  %v1154_v25 = vld [vmem:[#allocation2 + $0xb8] sm:$0xff] }
  0xbf   : > { %4095 = vmatmul.mubr.bf16.gmra.mrb[4].mxu0 %v2284_v16  ;;  %3894 = vmatprep.mubr.bf16.mxu1 %v4796_v53  ;;  %v2899_v53 = vld [vmem:[%s5358_s3 + $0xb8] sm:$0xff]  ;;  %v2287_v40 = vpack.c.bf16 %v2266_v30, %v2265_v44  ;;  %v4510_v16 = vld [vmem:[%s5356_s1 + $0x130] sm:$0xff]  }
  0xc0   : > { %4098 = vmatprep.mubr.bf16.mxu0 %v2285_v20  ;;  %4123 = vmatpush3.bf16.msra.mxu0 %v4496_v31  ;;  %v4509_v31 = vld [vmem:[%s5356_s1 + $0x128] sm:$0xff]  }
  0xc1   : > { %4124 = vmatprep.subr.bf16.mxu0 %v4499_v22  ;;  %3021 = vperm.xlu1 %4415, %v2899_v53   ;;  %v1152_v20 = vld [vmem:[#allocation2 + $0xa8] sm:$0xff]  ;;  %v2563_v53 = vpack.c.bf16 %v2538_v27, %v2537_v26 }
  0xc2   : > { %3016 = vperm.xlu0 %4414, %v2898_v35   ;;  %v1170_v44 = vpack.c.bf16 %v1152_v20, %v1151_v17  ;;  %v2539_v35 = vld [vmem:[#allocation2 + $0x52] sm:$0xff]  ;;  %v2556_v17 = vld [vmem:[#allocation2 + $0xda] sm:$0xff] }
  0xc4   : > { %4125 = vmatpush3.bf16.msra.mxu0 %v4499_v22  ;;  %v2535_v22 = vld [vmem:[#allocation2 + $0x32] sm:$0xff] }
  0xc5   : > { %4126 = vmatprep.subr.bf16.mxu0 %v4500_v32  ;;  %3031 = vperm.xlu1 %4415, %v2901_v36   ;;  %v2562_v30 = vpack.c.bf16 %v2536_v23, %v2535_v22  ;;  %v1158_v36 = vld [vmem:[#allocation2 + $0xd8] sm:$0xff] }
  0xc6   : > { %3895 = vmatmul.mubr.bf16.gmra.mrb[24].mxu1 %v4799_v58  ;;  %v4502_v58 = vld [vmem:[%s5356_s1 + $0x230] sm:$0xff]   ;;  %3026 = vperm.xlu0 %4414, %v2900_v56   ;;  %v2560_v23 = vld [vmem:[#allocation2 + $0xfa] sm:$0xff] }
  0xc7   : > { %4099 = vmatmul.mubr.bf16.gmra.mrb[8].mxu0 %v2286_v33  ;;  %3914 = vmatprep.mubr.bf16.mxu1 %v1161_v34  ;;  %v1155_v33 = vld [vmem:[#allocation2 + $0xc0] sm:$0xff]  ;;  %v1156_v34 = vld [vmem:[#allocation2 + $0xc8] sm:$0xff]  ;;  %v2559_v22 = vld [vmem:[#allocation2 + $0xf2] sm:$0xff] }
  0xc8   : > { %4102 = vmatprep.mubr.bf16.mxu0 %v2287_v40  ;;  %4127 = vmatpush3.bf16.msra.mxu0 %v4500_v32  ;;  %v1171_v32 = vpack.c.bf16 %v1154_v25, %v1153_v24  ;;  %v2540_v40 = vld [vmem:[#allocation2 + $0x5a] sm:$0xff]  ;;  %v1172_v56 = vpack.c.bf16 %v1156_v34, %v1155_v33  ;;  %v2574_v24 = vpack.c.bf16 %v2560_v23, %v2559_v22 }
  0xc9   : > { %4128 = vmatprep.subr.bf16.mxu0 %v4501_v54  ;;  %3041 = vperm.xlu1 %4415, %v2903_v43   ;;  %v2564_v39 = vpack.c.bf16 %v2540_v40, %v2539_v35  ;;  %v2543_v43 = vld [vmem:[#allocation2 + $0x72] sm:$0xff] }
  0xca   : > { %3036 = vperm.xlu0 %4414, %v2902_v46   ;;  %v1429_v46 = vld [vmem:[#allocation2 + $0x91] sm:$0xff] }
  0xcc   : > { %4129 = vmatpush3.bf16.msra.mxu0 %v4501_v54  ;;  %v1157_v54 = vld [vmem:[#allocation2 + $0xd0] sm:$0xff] }
  0xcd   : > { %4130 = vmatprep.subr.bf16.mxu0 %v4502_v58  ;;  %v1173_v7 = vpack.c.bf16 %v1158_v36, %v1157_v54 }
  0xce   : > { %3915 = vmatmul.mubr.bf16.vlgmr.msra.gmra.mrb[0].mxu1 %v1162_v41  ;;  %v1159_v41 = vld [vmem:[#allocation2 + $0xe0] sm:$0xff] }
  0xcf   : > { %4103 = vmatmul.mubr.bf16.gmra.mrb[12].mxu0 %v4695_v52  ;;  %3918 = vmatprep.mubr.bf16.mxu1 %v1163_v45  ;;  %v4506_v52 = vld [vmem:[%s5356_s1 + $0x110] sm:$0xff]   ;;  %v2544_v45 = vld [vmem:[#allocation2 + $0x7a] sm:$0xff]  ;;  %v1174_v19 = vpack.c.bf16 %v4512_v49, %v1159_v41 }
  0xd0   : > { %4106 = vmatprep.mubr.bf16.mxu0 %v4704_v55  ;;  %4170 = vmatpush3.bf16.msra.mxu1 %v4940_v5  ;;  %v1143_v55 = vld [vmem:[#allocation2 + $0x60] sm:$0xff] }
  0xd1   : > { %4163 = vmatprep.subr.bf16.mxu1 %v4505_v50  ;;  %4131 = vmatpush3.bf16.msra.mxu0 %v4502_v58  ;;  %v1166_v21 = vpack.c.bf16 %v1144_v59, %v1143_v55  ;;  %v2280_v5 = vld [vmem:[#allocation2 + $0xf9] sm:$0xff]  ;;  %v2565_v58 = vpack.c.bf16 %v2542_v38, %v2541_v37  ;;  %v1432_v55 = vld [vmem:[#allocation2 + $0xa9] sm:$0xff] }
  0xd2   : > { %4132 = vmatprep.subr.bf16.mxu0 %v4503_v47  ;;  %v2294_v15 = vpack.c.bf16 %v2280_v5, %v2279_v4  ;;  %v2547_v59 = vld [vmem:[#allocation2 + $0x92] sm:$0xff]  ;;  %v1436_v4 = vld [vmem:[#allocation2 + $0xc9] sm:$0xff] }
  0xd3   : > { %v2551_v5 = vld [vmem:[#allocation2 + $0xb2] sm:$0xff] }
  0xd4   : > { %4171 = vmatpush3.bf16.msra.mxu1 %v4505_v50  ;;  %v2566_v50 = vpack.c.bf16 %v2544_v45, %v2543_v43 }
  0xd5   : > { %4164 = vmatprep.subr.bf16.mxu1 %v4506_v52  ;;  %4133 = vmatpush3.bf16.msra.mxu0 %v4503_v47  ;;  %v1430_v47 = vld [vmem:[#allocation2 + $0x99] sm:$0xff] }
  0xd6   : > { %3919 = vmatmul.mubr.bf16.gmra.mrb[4].mxu1 %v1164_v51  ;;  %v1449_v51 = vpack.c.bf16 %v1430_v47, %v1429_v46 }
  0xd7   : > { %4107 = vmatmul.mubr.bf16.gmra.mrb[16].mxu0 %v4720_v6  ;;  %3922 = vmatprep.mubr.bf16.mxu1 %v1165_v57  ;;  %v4508_v6 = vld [vmem:[%s5356_s1 + $0x120] sm:$0xff]   ;;  %v2567_v57 = vpack.c.bf16 %v2546_v9, %v2545_v48 }
  0xd8   : > { %4110 = vmatprep.mubr.bf16.mxu0 %v4724_v8  ;;  %4172 = vmatpush3.bf16.msra.mxu1 %v4506_v52  ;;  %v1147_v8 = vld [vmem:[#allocation2 + $0x80] sm:$0xff] }
  0xd9   : > { %4165 = vmatprep.subr.bf16.mxu1 %v4507_v1  ;;  %v1168_v14 = vpack.c.bf16 %v1148_v3, %v1147_v8  ;;  %v1431_v52 = vld [vmem:[#allocation2 + $0xa1] sm:$0xff]  ;;  %v5064_v9 = vld [vmem:[%s5357_s2] ss:$0 sm:$0xff] }
  0xda   : > { %v1435_v3 = vld [vmem:[#allocation2 + $0xc1] sm:$0xff] }
  0xdc   : > { %4173 = vmatpush3.bf16.msra.mxu1 %v4507_v1  ;;  %v2550_v1 = vld [vmem:[#allocation2 + $0xaa] sm:$0xff] }
  0xdd   : > { %4166 = vmatprep.subr.bf16.mxu1 %v4508_v6  ;;  %v2569_v8 = vpack.c.bf16 %v2550_v1, %v2549_v63 }
  0xde   : > { %3923 = vmatmul.mubr.bf16.gmra.mrb[8].mxu1 %v1166_v21  ;;  %v1450_v21 = vpack.c.bf16 %v1432_v55, %v1431_v52 }
  0xdf   : > { %4111 = vmatmul.mubr.bf16.gmra.mrb[20].mxu0 %v4738_v18  ;;  %3926 = vmatprep.mubr.bf16.mxu1 %v1167_v2  ;;  %v1169_v18 = vpack.c.bf16 %v1150_v11, %v1149_v10  ;;  %v2568_v2 = vpack.c.bf16 %v2548_v60, %v2547_v59  ;;  %v2552_v10 = vld [vmem:[#allocation2 + $0xba] sm:$0xff]  ;;  %v1437_v11 = vld [vmem:[#allocation2 + $0xd1] sm:$0xff] }
  0xe0   : > { %4114 = vmatprep.mubr.bf16.mxu0 %v5017_v29  ;;  %4174 = vmatpush3.bf16.msra.mxu1 %v4508_v6  ;;  %v1451_v6 = vpack.c.bf16 %v1434_v62, %v1433_v61 }
  0xe1   : > { %4167 = vmatprep.subr.bf16.mxu1 %v4509_v31 }
  0xe4   : > { %4175 = vmatpush3.bf16.msra.mxu1 %v4509_v31  ;;  %v2554_v31 = vld [vmem:[#allocation2 + $0xca] sm:$0xff] }
  0xe5   : > { %4168 = vmatprep.subr.bf16.mxu1 %v4510_v16 }
  0xe6   : > { %3927 = vmatmul.mubr.bf16.gmra.mrb[12].mxu1 %v1168_v14  ;;  %v1452_v14 = vpack.c.bf16 %v1436_v4, %v1435_v3 }
  0xe7   : > { %4115 = vmatmul.mubr.bf16.gmra.mrb[24].mxu0 %v2294_v15  ;;  %3930 = vmatprep.mubr.bf16.mxu1 %v1169_v18  ;;  %v2570_v15 = vpack.c.bf16 %v2552_v10, %v2551_v5  ;;  %v1453_v18 = vpack.c.bf16 %v1438_v12, %v1437_v11 }
  0xe8   : > { %4134 = vmatprep.mubr.bf16.mxu0 %v2561_v42  ;;  %4176 = vmatpush3.bf16.msra.mxu1 %v4510_v16  ;;  %v2571_v42 = vpack.c.bf16 %v2554_v31, %v2553_v13  ;;  %v2555_v16 = vld [vmem:[#allocation2 + $0xd2] sm:$0xff] }
  0xe9   : > { %4169 = vmatprep.subr.bf16.mxu1 %v4511_v28  ;;  %v2572_v20 = vpack.c.bf16 %v2556_v17, %v2555_v16 }
  0xec   : > { %4177 = vmatpush3.bf16.msra.mxu1 %v4511_v28 }
  0xee   : > { %3931 = vmatmul.mubr.bf16.gmra.mrb[16].mxu1 %v1170_v44 }
  0xef   : > { %4135 = vmatmul.mubr.bf16.vlgmr.msra.gmra.mrb[0].mxu0 %v2562_v30  ;;  %3934 = vmatprep.mubr.bf16.mxu1 %v1171_v32 }
  0xf0   : > { %4138 = vmatprep.mubr.bf16.mxu0 %v2563_v53 }
  0xf6   : > { %3935 = vmatmul.mubr.bf16.gmra.mrb[20].mxu1 %v1172_v56 }
  0xf7   : > { %4139 = vmatmul.mubr.bf16.gmra.mrb[4].mxu0 %v2564_v39  ;;  %3938 = vmatprep.mubr.bf16.mxu1 %v1173_v7 }
  0xf8   : > { %4142 = vmatprep.mubr.bf16.mxu0 %v2565_v58 }
  0xf9   : > { %v2917_v30 = vpop.permute.xlu1 %2916 }
  0xfa   : > { %v2907_v27 = vpop.permute.xlu0 %2906 }
  0xfd   : > { %v2922_v40 = vpop.permute.xlu1 %2921 }
  0xfe   : > { %3939 = vmatmul.mubr.bf16.gmra.mrb[24].mxu1 %v1174_v19 }
  0xff   : > { %4143 = vmatmul.mubr.bf16.gmra.mrb[8].mxu0 %v2566_v50  ;;  %3974 = vmatprep.mubr.bf16.mxu1 %v1449_v51 }
 0x100   : > { %4146 = vmatprep.mubr.bf16.mxu0 %v2567_v57  ;;  %v2912_v32 = vpop.permute.xlu0 %2911 }
 0x101   : > { %v5043_v37 = vpop.permute.xlu1 %2931 }
 0x105   : > { %v2942_v7 = vpop.permute.xlu1 %2941 }
 0x106   : > { %3975 = vmatmul.mubr.bf16.vlgmr.msra.gmra.mrb[16].mxu1 %v1450_v21 }
 0x107   : > { %4147 = vmatmul.mubr.bf16.gmra.mrb[12].mxu0 %v2568_v2  ;;  %3978 = vmatprep.mubr.bf16.mxu1 %v1451_v6 }
 0x108   : > { %4150 = vmatprep.mubr.bf16.mxu0 %v2569_v8 }
 0x109   : > { %v5057_v46 = vpop.permute.xlu1 %2951 }
 0x10d   : > { %v5068_v59 = vpop.permute.xlu1 %2961 }
 0x10e   : > { %3979 = vmatmul.mubr.bf16.gmra.mrb[20].mxu1 %v1452_v14 }
 0x10f   : > { %4151 = vmatmul.mubr.bf16.gmra.mrb[16].mxu0 %v2570_v15  ;;  %3982 = vmatprep.mubr.bf16.mxu1 %v1453_v18 }
 0x110   : > { %4154 = vmatprep.mubr.bf16.mxu0 %v2571_v42 }
 0x111   : > { %v5088_v13 = vpop.permute.xlu1 %2971 }
 0x116   : > { %3983 = vmatmul.mubr.bf16.gmra.mrb[24].mxu1 %v5017_v29  ;;  %v5035_v29 = vpop.permute.xlu0 %2926 }
 0x117   : > { %4155 = vmatmul.mubr.bf16.gmra.mrb[20].mxu0 %v2572_v20 }
 0x118   : > { %4158 = vmatprep.mubr.bf16.mxu0 %v4810_v0 }
 0x11f   : > { %4159 = vmatmul.mubr.bf16.gmra.mrb[24].mxu0 %v2574_v24 }
 0x120   : > { %v2937_v56 = vpop.permute.xlu0 %2936 }
 0x124   : > { %v5051_v41 = vpop.permute.xlu0 %2946 }
 0x128   : > { %v5059_v47 = vpop.permute.xlu0 %2956 }
 0x12c   : > { %v5071_v62 = vpop.permute.xlu0 %2966 }
 0x131   : > { %v5094_v18 = vpop.permute.xlu0 %2976 }
 0x1a1   : > { %v3916_v25 = vpop.f32.mrb[0].mxu1 }
 0x1a2   : > { %v1274_v26 = vpop.f32.mrb[1].mxu1 }
 0x1a3   : > { %v3917_v28 = vpop.f32.mrb[2].mxu1 }
 0x1a4   : > { %v1277_v44 = vpop.f32.mrb[3].mxu1 }
 0x1a9   : > { %v3920_v53 = vpop.f32.mrb[4].mxu1 }
 0x1aa   : > { %v1290_v33 = vpop.f32.mrb[5].mxu1 }
 0x1ab   : > { %v3921_v34 = vpop.f32.mrb[6].mxu1 }
 0x1ac   : > { %v1293_v35 = vpop.f32.mrb[7].mxu1 }
 0x1b1   : > { %v5037_v54 = vpop.f32.mrb[8].mxu1 }
 0x1b2   : > { %v5039_v0 = vpop.f32.mrb[9].mxu1 }
 0x1b3   : > { %v5041_v36 = vpop.f32.mrb[10].mxu1 }
 0x1b4   : > { %v5045_v38 = vpop.f32.mrb[11].mxu1 }
 0x1b9   : > { %v5047_v39 = vpop.f32.mrb[12].mxu1 }
 0x1ba   : > { %v5049_v58 = vpop.f32.mrb[13].mxu1 }
 0x1bb   : > { %v5053_v43 = vpop.f32.mrb[14].mxu1 }
 0x1bc   : > { %v5055_v45 = vpop.f32.mrb[15].mxu1 }
 0x1c2   : > { %v4136_v48 = vpop.f32.mrb[0].mxu0 }
 0x1c3   : > { %v4178_v49 = vadd.f32 %v4136_v48, %v3916_v25  ;;  %v2674_v19 = vpop.f32.mrb[1].mxu0 }
 0x1c4   : > { %v4179_v50 = vadd.f32 %v2674_v19, %v1274_v26  ;;  %v4137_v51 = vpop.f32.mrb[2].mxu0 }
 0x1c5   : > { %v2822_v57 = vadd.f32 %v4178_v49, %v5064_v9  ;;  %v4180_v52 = vadd.f32 %v4137_v51, %v3917_v28  ;;  %v2677_v55 = vpop.f32.mrb[3].mxu0 }
 0x1c6   : > { %v2820_v60 = vadd.f32 %v4179_v50, %v5064_v9  ;;  %v4181_v61 = vadd.f32 %v2677_v55, %v1277_v44  ;;  %v5106_v44 = vpop.permute.xlu1 %2981 }
 0x1c7   : > { %v2850_v63 = vmax.f32 %v2822_v57, 0.0  ;;  %v2823_v1 = vadd.f32 %v4180_v52, %v5064_v9 }
 0x1c8   : > { %v2848_v21 = vmax.f32 %v2820_v60, 0.0  ;;  %v2821_v2 = vadd.f32 %v4181_v61, %v5064_v9 }
 0x1c9   : > { %v5080_v6 = vmul.f32 %v2917_v30, %v2850_v63  ;;  %v2851_v8 = vmax.f32 %v2823_v1, 0.0 }
 0x1ca   : > { %v5082_v3 = vmul.f32 %v2907_v27, %v2848_v21  ;;  %v2849_v4 = vmax.f32 %v2821_v2, 0.0  ;;  %v4140_v5 = vpop.f32.mrb[4].mxu0  ;;  %v5133_v57 = vpop.permute.xlu1 %2991 }
 0x1cb   : > { %3074 = vst [vmem:[%s5077_s11 + $0x10] sm:$0xff] %v5080_v6  ;;  %v5086_v10 = vmul.f32 %v2922_v40, %v2851_v8  ;;  %v4182_v11 = vadd.f32 %v4140_v5, %v3920_v53  ;;  %v2690_v12 = vpop.f32.mrb[5].mxu0 }
 0x1cc   : > { %3072 = vst [vmem:[%s5077_s11] sm:$0xff] %v5082_v3  ;;  %v5092_v31 = vmul.f32 %v2912_v32, %v2849_v4  ;;  %v4183_v14 = vadd.f32 %v2690_v12, %v1290_v33  ;;  %v4141_v15 = vpop.f32.mrb[6].mxu0  ;;  %v5111_v33 = vpop.permute.xlu0 %2986 }
 0x1cd   : > { %3075 = vst [vmem:[%s5077_s11 + $0x18] sm:$0xff] %v5086_v10  ;;  %v2826_v42 = vadd.f32 %v4182_v11, %v5064_v9  ;;  %v4184_v16 = vadd.f32 %v4141_v15, %v3921_v34  ;;  %v2693_v17 = vpop.f32.mrb[7].mxu0 }
 0x1ce   : > { %3073 = vst [vmem:[%s5077_s11 + $0x8] sm:$0xff] %v5092_v31  ;;  %v2824_v20 = vadd.f32 %v4183_v14, %v5064_v9  ;;  %v4185_v22 = vadd.f32 %v2693_v17, %v1293_v35 }
 0x1cf   : > { %v2854_v23 = vmax.f32 %v2826_v42, 0.0  ;;  %v2827_v24 = vadd.f32 %v4184_v16, %v5064_v9 }
 0x1d0   : > { %v2852_v25 = vmax.f32 %v2824_v20, 0.0  ;;  %v2825_v26 = vadd.f32 %v4185_v22, %v5064_v9  ;;  %v2997_v55 = vpop.permute.xlu0 %2996 }
 0x1d1   : > { %v5104_v27 = vmul.f32 %v2937_v56, %v2854_v23  ;;  %v2855_v28 = vmax.f32 %v2827_v24, 0.0 }
 0x1d2   : > { %v5109_v30 = vmul.f32 %v5035_v29, %v2852_v25  ;;  %v2853_v32 = vmax.f32 %v2825_v26, 0.0  ;;  %v4144_v53 = vpop.f32.mrb[8].mxu0 }
 0x1d3   : > { %3078 = vst [vmem:[%s5077_s11 + $0x30] sm:$0xff] %v5104_v27  ;;  %v5115_v34 = vmul.f32 %v2942_v7, %v2855_v28  ;;  %v4186_v35 = vadd.f32 %v4144_v53, %v5037_v54  ;;  %v2706_v40 = vpop.f32.mrb[9].mxu0 }
 0x1d4   : > { %3076 = vst [vmem:[%s5077_s11 + $0x20] sm:$0xff] %v5109_v30  ;;  %v5121_v56 = vmul.f32 %v5043_v37, %v2853_v32  ;;  %v4187_v29 = vadd.f32 %v2706_v40, %v5039_v0  ;;  %v4145_v48 = vpop.f32.mrb[10].mxu0  ;;  %v5164_v22 = vpop.permute.xlu0 %3006 }
 0x1d5   : > { %3079 = vst [vmem:[%s5077_s11 + $0x38] sm:$0xff] %v5115_v34  ;;  %v2830_v49 = vadd.f32 %v4186_v35, %v5064_v9  ;;  %v4188_v19 = vadd.f32 %v4145_v48, %v5041_v36  ;;  %v2709_v50 = vpop.f32.mrb[11].mxu0 }
 0x1d6   : > { %3077 = vst [vmem:[%s5077_s11 + $0x28] sm:$0xff] %v5121_v56  ;;  %v2828_v54 = vadd.f32 %v4187_v29, %v5064_v9  ;;  %v4189_v7 = vadd.f32 %v2709_v50, %v5045_v38 }
 0x1d7   : > { %v2858_v51 = vmax.f32 %v2830_v49, 0.0  ;;  %v2831_v37 = vadd.f32 %v4188_v19, %v5064_v9 }
 0x1d8   : > { %v2856_v0 = vmax.f32 %v2828_v54, 0.0  ;;  %v2829_v52 = vadd.f32 %v4189_v7, %v5064_v9 }
 0x1d9   : > { %v5137_v36 = vmul.f32 %v5059_v47, %v2858_v51  ;;  %v2859_v60 = vmax.f32 %v2831_v37, 0.0  ;;  %v3976_v61 = vpop.f32.mrb[16].mxu1 }
 0x1da   : > { %v5140_v63 = vmul.f32 %v5051_v41, %v2856_v0  ;;  %v2857_v38 = vmax.f32 %v2829_v52, 0.0  ;;  %v4148_v1 = vpop.f32.mrb[12].mxu0  ;;  %v1618_v21 = vpop.f32.mrb[17].mxu1 }
 0x1db   : > { %3082 = vst [vmem:[%s5077_s11 + $0x50] sm:$0xff] %v5137_v36  ;;  %v5145_v2 = vmul.f32 %v5068_v59, %v2859_v60  ;;  %v4190_v8 = vadd.f32 %v4148_v1, %v5047_v39  ;;  %v2722_v4 = vpop.f32.mrb[13].mxu0  ;;  %v3977_v47 = vpop.f32.mrb[18].mxu1 }
 0x1dc   : > { %3080 = vst [vmem:[%s5077_s11 + $0x40] sm:$0xff] %v5140_v63  ;;  %v5151_v5 = vmul.f32 %v5057_v46, %v2857_v38  ;;  %v4191_v41 = vadd.f32 %v2722_v4, %v5049_v58  ;;  %v4149_v11 = vpop.f32.mrb[14].mxu0  ;;  %v1621_v12 = vpop.f32.mrb[19].mxu1 }
 0x1dd   : > { %3083 = vst [vmem:[%s5077_s11 + $0x58] sm:$0xff] %v5145_v2  ;;  %v2834_v14 = vadd.f32 %v4190_v8, %v5064_v9  ;;  %v4192_v59 = vadd.f32 %v4149_v11, %v5053_v43  ;;  %v2725_v15 = vpop.f32.mrb[15].mxu0  ;;  %v3002_v58 = vpop.permute.xlu1 %3001 }
 0x1de   : > { %3081 = vst [vmem:[%s5077_s11 + $0x48] sm:$0xff] %v5151_v5  ;;  %v2832_v39 = vadd.f32 %v4191_v41, %v5064_v9  ;;  %v4193_v42 = vadd.f32 %v2725_v15, %v5055_v45  ;;  %v3017_v52 = vpop.permute.xlu0 %3016 }
 0x1df   : > { %v2862_v46 = vmax.f32 %v2834_v14, 0.0  ;;  %v2835_v16 = vadd.f32 %v4192_v59, %v5064_v9 }
 0x1e0   : > { %v2860_v17 = vmax.f32 %v2832_v39, 0.0  ;;  %v2833_v20 = vadd.f32 %v4193_v42, %v5064_v9 }
 0x1e1   : > { %v5167_v43 = vmul.f32 %v5094_v18, %v2862_v46  ;;  %v2863_v23 = vmax.f32 %v2835_v16, 0.0  ;;  %v3980_v24 = vpop.f32.mrb[20].mxu1 }
 0x1e2   : > { %v5170_v25 = vmul.f32 %v5071_v62, %v2860_v17  ;;  %v2861_v45 = vmax.f32 %v2833_v20, 0.0  ;;  %v4152_v26 = vpop.f32.mrb[16].mxu0  ;;  %v1634_v28 = vpop.f32.mrb[21].mxu1 }
 0x1e3   : > { %3086 = vst [vmem:[%s5077_s11 + $0x70] sm:$0xff] %v5167_v43  ;;  %v5175_v32 = vmul.f32 %v5106_v44, %v2863_v23  ;;  %v4194_v53 = vadd.f32 %v4152_v26, %v3976_v61  ;;  %v2738_v35 = vpop.f32.mrb[17].mxu0  ;;  %v3981_v40 = vpop.f32.mrb[22].mxu1 }
 0x1e4   : > { %3084 = vst [vmem:[%s5077_s11 + $0x60] sm:$0xff] %v5170_v25  ;;  %v5180_v18 = vmul.f32 %v5088_v13, %v2861_v45  ;;  %v4195_v29 = vadd.f32 %v2738_v35, %v1618_v21  ;;  %v4153_v62 = vpop.f32.mrb[18].mxu0  ;;  %v1637_v48 = vpop.f32.mrb[23].mxu1 }
 0x1e5   : > { %3087 = vst [vmem:[%s5077_s11 + $0x78] sm:$0xff] %v5175_v32  ;;  %v2838_v49 = vadd.f32 %v4194_v53, %v5064_v9  ;;  %v4196_v19 = vadd.f32 %v4153_v62, %v3977_v47  ;;  %v2741_v50 = vpop.f32.mrb[19].mxu0  ;;  %v3012_v13 = vpop.permute.xlu1 %3011 }
 0x1e6   : > { %3085 = vst [vmem:[%s5077_s11 + $0x68] sm:$0xff] %v5180_v18  ;;  %v2836_v44 = vadd.f32 %v4195_v29, %v5064_v9  ;;  %v4197_v54 = vadd.f32 %v2741_v50, %v1621_v12  ;;  %v3027_v26 = vpop.permute.xlu0 %3026 }
 0x1e7   : > { %v2866_v7 = vmax.f32 %v2838_v49, 0.0  ;;  %v2839_v51 = vadd.f32 %v4196_v19, %v5064_v9 }
 0x1e8   : > { %v2864_v37 = vmax.f32 %v2836_v44, 0.0  ;;  %v2837_v0 = vadd.f32 %v4197_v54, %v5064_v9 }
 0x1e9   : > { %v5190_v60 = vmul.f32 %v2997_v55, %v2866_v7  ;;  %v2867_v61 = vmax.f32 %v2839_v51, 0.0  ;;  %v3984_v38 = vpop.f32.mrb[24].mxu1  ;;  %v3022_v46 = vpop.permute.xlu1 %3021 }
 0x1ea   : > { %v5193_v1 = vmul.f32 %v5111_v33, %v2864_v37  ;;  %v2865_v21 = vmax.f32 %v2837_v0, 0.0  ;;  %v4156_v8 = vpop.f32.mrb[20].mxu0  ;;  %v1650_v4 = vpop.f32.mrb[25].mxu1 }
 0x1eb   : > { %3090 = vst [vmem:[%s5077_s11 + $0x90] sm:$0xff] %v5190_v60  ;;  %v5197_v47 = vmul.f32 %v3002_v58, %v2867_v61  ;;  %v4198_v41 = vadd.f32 %v4156_v8, %v3980_v24  ;;  %v2754_v11 = vpop.f32.mrb[21].mxu0  ;;  %v3985_v12 = vpop.f32.mrb[26].mxu1 }
 0x1ec   : > { %3088 = vst [vmem:[%s5077_s11 + $0x80] sm:$0xff] %v5193_v1  ;;  %v5202_v55 = vmul.f32 %v5133_v57, %v2865_v21  ;;  %v4199_v14 = vadd.f32 %v2754_v11, %v1634_v28  ;;  %v4157_v59 = vpop.f32.mrb[22].mxu0  ;;  %v1653_v33 = vpop.f32.mrb[27].mxu1 }
 0x1ed   : > { %3091 = vst [vmem:[%s5077_s11 + $0x98] sm:$0xff] %v5197_v47  ;;  %v2842_v15 = vadd.f32 %v4198_v41, %v5064_v9  ;;  %v4200_v39 = vadd.f32 %v4157_v59, %v3981_v40  ;;  %v2757_v42 = vpop.f32.mrb[23].mxu0  ;;  %v3037_v0 = vpop.permute.xlu0 %3036 }
 0x1ee   : > { %3089 = vst [vmem:[%s5077_s11 + $0x88] sm:$0xff] %v5202_v55  ;;  %v2840_v16 = vadd.f32 %v4199_v14, %v5064_v9  ;;  %v4201_v58 = vadd.f32 %v2757_v42, %v1637_v48  ;;  %v3032_v48 = vpop.permute.xlu1 %3031 }
 0x1ef   : > { %v2870_v17 = vmax.f32 %v2842_v15, 0.0  ;;  %v2843_v57 = vadd.f32 %v4200_v39, %v5064_v9 }
 0x1f0   : > { %v2868_v20 = vmax.f32 %v2840_v16, 0.0  ;;  %v2841_v23 = vadd.f32 %v4201_v58, %v5064_v9 }
 0x1f1   : > { %v5212_v24 = vmul.f32 %v3017_v52, %v2870_v17  ;;  %v2871_v45 = vmax.f32 %v2843_v57, 0.0 }
 0x1f2   : > { %v5215_v28 = vmul.f32 %v5164_v22, %v2868_v20  ;;  %v2869_v53 = vmax.f32 %v2841_v23, 0.0  ;;  %v4160_v35 = vpop.f32.mrb[24].mxu0  ;;  %v3042_v8 = vpop.permute.xlu1 %3041 }
 0x1f3   : > { %3094 = vst [vmem:[%s5077_s11 + $0xb0] sm:$0xff] %v5212_v24  ;;  %v5219_v40 = vmul.f32 %v3022_v46, %v2871_v45  ;;  %v4202_v29 = vadd.f32 %v4160_v35, %v3984_v38  ;;  %v2770_v62 = vpop.f32.mrb[25].mxu0 }
 0x1f4   : > { %3092 = vst [vmem:[%s5077_s11 + $0xa0] sm:$0xff] %v5215_v28  ;;  %v5223_v49 = vmul.f32 %v3012_v13, %v2869_v53  ;;  %v4203_v19 = vadd.f32 %v2770_v62, %v1650_v4  ;;  %v4161_v50 = vpop.f32.mrb[26].mxu0 }
 0x1f5   : > { %3095 = vst [vmem:[%s5077_s11 + $0xb8] sm:$0xff] %v5219_v40  ;;  %v2846_v22 = vadd.f32 %v4202_v29, %v5064_v9  ;;  %v4204_v44 = vadd.f32 %v4161_v50, %v3985_v12  ;;  %v2773_v54 = vpop.f32.mrb[27].mxu0 }
 0x1f6   : > { %3093 = vst [vmem:[%s5077_s11 + $0xa8] sm:$0xff] %v5223_v49  ;;  %v2844_v7 = vadd.f32 %v4203_v19, %v5064_v9  ;;  %v4205_v51 = vadd.f32 %v2773_v54, %v1653_v33 }
 0x1f7   : > { %v2874_v37 = vmax.f32 %v2846_v22, 0.0  ;;  %v2847_v13 = vadd.f32 %v4204_v44, %v5064_v9 }
 0x1f8   : > { %v2872_v52 = vmax.f32 %v2844_v7, 0.0  ;;  %v2845_v61 = vadd.f32 %v4205_v51, %v5064_v9  ;;  %3103 = sbr.rel (%p3481_p4) target bundleno = 511 (0x1ff), region = 40  ;;  %v4522_v9 = vmov (!%p3481_p4), 0.0  }
 0x1f9   : > { %v5233_v38 = vmul.f32 %v3037_v0, %v2874_v37  ;;  %v2875_v21 = vmax.f32 %v2847_v13, 0.0  ;;  %3104 = vst [vmem:[%s5360_s5] sm:$0x1] (!%p3481_p4), %v4522_v9  ;;  %3105 = vst [vmem:[%s5361_s6] sm:$0x1] (!%p3481_p4), %v4522_v9 }
 0x1fa   : > { %v5235_v4 = vmul.f32 %v3027_v26, %v2872_v52  ;;  %v2873_v41 = vmax.f32 %v2845_v61, 0.0 }
 0x1fb   : > { %3098 = vst [vmem:[%s5077_s11 + $0xd0] sm:$0xff] %v5233_v38  ;;  %v5239_v11 = vmul.f32 %v3042_v8, %v2875_v21 }
 0x1fc   : > { %3096 = vst [vmem:[%s5077_s11 + $0xc0] sm:$0xff] %v5235_v4  ;;  %v5243_v12 = vmul.f32 %v3032_v48, %v2873_v41 }
 0x1fd   : > { %3099 = vst [vmem:[%s5077_s11 + $0xd8] sm:$0xff] %v5239_v11 }
 0x1fe   : > { %3097 = vst [vmem:[%s5077_s11 + $0xc8] sm:$0xff] %v5243_v12 }
 0x1ff PF: > { %v3107_v14 = vadd.f32 %v5092_v31, %v5082_v3  ;;  %v3143_v15 = vmul.f32 %v5082_v3, %v5082_v3  ;;  %v3144_v39 = vmul.f32 %v5092_v31, %v5092_v31  ;;  %v3145_v46 = vmul.f32 %v5080_v6, %v5080_v6 }
 0x200   : > { %v3146_v58 = vmul.f32 %v5086_v10, %v5086_v10  ;;  %v3147_v20 = vmul.f32 %v5109_v30, %v5109_v30  ;;  %v3148_v31 = vmul.f32 %v5121_v56, %v5121_v56  ;;  %v3149_v26 = vmul.f32 %v5104_v27, %v5104_v27 }
 0x201   : > { %v3108_v59 = vadd.f32 %v3107_v14, %v5080_v6  ;;  %v3171_v17 = vadd.f32 %v3144_v39, %v3143_v15  ;;  %v3150_v35 = vmul.f32 %v5115_v34, %v5115_v34  ;;  %v3151_v62 = vmul.f32 %v5140_v63, %v5140_v63 }
 0x202   : > { %v3152_v19 = vmul.f32 %v5151_v5, %v5151_v5  ;;  %v3153_v22 = vmul.f32 %v5137_v36, %v5137_v36  ;;  %v3154_v54 = vmul.f32 %v5145_v2, %v5145_v2  ;;  %v3155_v51 = vmul.f32 %v5170_v25, %v5170_v25 }
 0x203   : > { %v3109_v33 = vadd.f32 %v3108_v59, %v5086_v10  ;;  %v3172_v3 = vadd.f32 %v3171_v17, %v3145_v46  ;;  %v3156_v13 = vmul.f32 %v5180_v18, %v5180_v18  ;;  %v3157_v52 = vmul.f32 %v5167_v43, %v5167_v43 }
 0x204   : > { %v3158_v21 = vmul.f32 %v5175_v32, %v5175_v32  ;;  %v3159_v41 = vmul.f32 %v5193_v1, %v5193_v1  ;;  %v3160_v14 = vmul.f32 %v5202_v55, %v5202_v55  ;;  %v3162_v39 = vmul.f32 %v5197_v47, %v5197_v47 }
 0x205   : > { %v3110_v42 = vadd.f32 %v3109_v33, %v5109_v30  ;;  %v3173_v45 = vadd.f32 %v3172_v3, %v3146_v58  ;;  %v3161_v33 = vmul.f32 %v5190_v60, %v5190_v60  ;;  %v3163_v46 = vmul.f32 %v5215_v28, %v5215_v28 }
 0x206   : > { %v3164_v58 = vmul.f32 %v5223_v49, %v5223_v49  ;;  %v3166_v3 = vmul.f32 %v5219_v40, %v5219_v40 }
 0x207   : > { %v3111_v16 = vadd.f32 %v3110_v42, %v5121_v56  ;;  %v3174_v53 = vadd.f32 %v3173_v45, %v3147_v20 }
 0x209   : > { %v3112_v57 = vadd.f32 %v3111_v16, %v5104_v27  ;;  %v3175_v29 = vadd.f32 %v3174_v53, %v3148_v31  ;;  %v3167_v31 = vmul.f32 %v5235_v4, %v5235_v4  ;;  %v3169_v53 = vmul.f32 %v5233_v38, %v5233_v38 }
 0x20b   : > { %v3113_v23 = vadd.f32 %v3112_v57, %v5115_v34  ;;  %v3176_v48 = vadd.f32 %v3175_v29, %v3149_v26  ;;  %v3165_v57 = vmul.f32 %v5212_v24, %v5212_v24 }
 0x20d   : > { %v3114_v6 = vadd.f32 %v3113_v23, %v5140_v63  ;;  %v3177_v50 = vadd.f32 %v3176_v48, %v3150_v35 }
 0x20f   : > { %v3115_v10 = vadd.f32 %v3114_v6, %v5151_v5  ;;  %v3178_v44 = vadd.f32 %v3177_v50, %v3151_v62  ;;  %v3168_v6 = vmul.f32 %v5243_v12, %v5243_v12 }
 0x211   : > { %v3116_v30 = vadd.f32 %v3115_v10, %v5137_v36  ;;  %v3179_v7 = vadd.f32 %v3178_v44, %v3152_v19 }
 0x213   : > { %v3117_v56 = vadd.f32 %v3116_v30, %v5145_v2  ;;  %v3180_v37 = vadd.f32 %v3179_v7, %v3153_v22 }
 0x215   : > { %v3118_v27 = vadd.f32 %v3117_v56, %v5170_v25  ;;  %v3181_v0 = vadd.f32 %v3180_v37, %v3154_v54 }
 0x217   : > { %v3119_v34 = vadd.f32 %v3118_v27, %v5180_v18  ;;  %v3182_v61 = vadd.f32 %v3181_v0, %v3155_v51 }
 0x219   : > { %v3120_v63 = vadd.f32 %v3119_v34, %v5167_v43  ;;  %v3183_v8 = vadd.f32 %v3182_v61, %v3156_v13  ;;  %v3142_v34 = vld [vmem:[%s5361_s6] sm:$0x1] }
 0x21b   : > { %v3121_v5 = vadd.f32 %v3120_v63, %v5175_v32  ;;  %v3184_v9 = vadd.f32 %v3183_v8, %v3157_v52 }
 0x21d   : > { %v3122_v36 = vadd.f32 %v3121_v5, %v5193_v1  ;;  %v3185_v59 = vadd.f32 %v3184_v9, %v3158_v21 }
 0x21f   : > { %v3123_v2 = vadd.f32 %v3122_v36, %v5202_v55  ;;  %v3186_v15 = vadd.f32 %v3185_v59, %v3159_v41 }
 0x221   : > { %v3124_v25 = vadd.f32 %v3123_v2, %v5190_v60  ;;  %v3187_v42 = vadd.f32 %v3186_v15, %v3160_v14 }
 0x223   : > { %v3125_v18 = vadd.f32 %v3124_v25, %v5197_v47  ;;  %v3188_v16 = vadd.f32 %v3187_v42, %v3161_v33 }
 0x225   : > { %v3126_v43 = vadd.f32 %v3125_v18, %v5215_v28  ;;  %v3189_v17 = vadd.f32 %v3188_v16, %v3162_v39 }
 0x227   : > { %v3127_v32 = vadd.f32 %v3126_v43, %v5223_v49  ;;  %v3190_v20 = vadd.f32 %v3189_v17, %v3163_v46 }
 0x229   : > { %v3128_v1 = vadd.f32 %v3127_v32, %v5212_v24  ;;  %v3191_v23 = vadd.f32 %v3190_v20, %v3164_v58 }
 0x22b   : > { %v3129_v55 = vadd.f32 %v3128_v1, %v5219_v40  ;;  %v3192_v45 = vadd.f32 %v3191_v23, %v3165_v57  ;;  %v3170_v40 = vmul.f32 %v5239_v11, %v5239_v11 }
 0x22d   : > { %v3130_v60 = vadd.f32 %v3129_v55, %v5235_v4  ;;  %v3193_v26 = vadd.f32 %v3192_v45, %v3166_v3 }
 0x22f   : > { %v3131_v47 = vadd.f32 %v3130_v60, %v5243_v12  ;;  %v3194_v10 = vadd.f32 %v3193_v26, %v3167_v31  ;;  %v3106_v12 = vld [vmem:[%s5360_s5] sm:$0x1] }
 0x231   : > { %v3132_v28 = vadd.f32 %v3131_v47, %v5233_v38  ;;  %v3195_v29 = vadd.f32 %v3194_v10, %v3168_v6 }
 0x233   : > { %v3133_v49 = vadd.f32 %v3132_v28, %v5239_v11  ;;  %v3196_v62 = vadd.f32 %v3195_v29, %v3169_v53 }
 0x235   : > { %v3134_v24 = vrot.slane %v3133_v49, 4  ;;  %v3197_v48 = vadd.f32 %v3196_v62, %v3170_v40 }
 0x237   : > { %v3135_v35 = vadd.f32 %v3134_v24, %v3133_v49  ;;  %v3198_v19 = vrot.slane %v3197_v48, 4 }
 0x239   : > { %v3136_v30 = vrot.slane %v3135_v35, 2  ;;  %v3199_v27 = vadd.f32 %v3198_v19, %v3197_v48 }
 0x23b   : > { %v3137_v4 = vadd.f32 %v3136_v30, %v3135_v35  ;;  %v3200_v38 = vrot.slane %v3199_v27, 2 }
 0x23d   : > { %v3138_v56 = vrot.slane %v3137_v4, 1  ;;  %v3201_v11 = vadd.f32 %v3200_v38, %v3199_v27 }
 0x23f   : > { %v3139_v50 = vadd.f32 %v3138_v56, %v3137_v4  ;;  %v3202_v44 = vrot.slane %v3201_v11, 1 }
 0x241   : > { %v3140_v22 = vadd.f32 %v3139_v50, %v3106_v12  ;;  %v3203_v54 = vadd.f32 %v3202_v44, %v3201_v11 }
 0x243   : > { %3141 = vst [vmem:[%s5360_s5] sm:$0x1] %v3140_v22  ;;  %v3204_v7 = vadd.f32 %v3203_v54, %v3142_v34 }
 0x245   : > { %3205 = vst [vmem:[%s5361_s6] sm:$0x1] %v3204_v7 }
 0x246 PF: > { %s17_s21 = sadd.s32 1, %s4519_s21  }
 0x247   : > { %p14_p5 = scmp.ge.s32.totalorder %s17_s21, 4  }
 0x249   :  { %16 = sbr.rel (!%p14_p5) target bundleno = 1 (0x1), region = 94 }

</bundles_post_ra>
